<compile_context>
chip_gen: v7x
topology: tpu7x:2x2x1
jax: 0.10.0
libtpu: 0.0.40
codegen_flags: <defaults>
</compile_context>

<pallas_src>
import functools
import math

import numpy as np
import jax
import jax.numpy as jnp
from jax.experimental import pallas as pl
from jax.experimental.pallas import tpu as pltpu

_EPS = 1e-5


# ----------------------- host-side weight preparation ----------------------- #
def _conv3x3_block_weights(w_hwio, width):
    """(3,3,Cin,Cout) conv weight -> (3, W*Cin, W*Cout) block-Toeplitz matrices.

    blk[dy][xp*Cin + c, x*Cout + o] = w[dy, xp-x+1, c, o] when 0 <= xp-x+1 <= 2,
    so a lane-folded row (one image line) times blk[dy] is the dy-tap of the
    3x3 conv with the horizontal zero padding folded in.
    """
    w_np = np.asarray(w_hwio, np.float32)
    _, _, cin, cout = w_np.shape
    blk = np.zeros((3, width * cin, width * cout), np.float32)
    for dy in range(3):
        for dx in range(3):
            for x in range(width):
                xp = x + dx - 1
                if 0 <= xp < width:
                    blk[dy, xp * cin:(xp + 1) * cin, x * cout:(x + 1) * cout] = w_np[dy, dx]
    return blk


def _conv1x1_block_weight(w_io, width):
    """(Cin,Cout) 1x1 conv weight -> block-diagonal (W*Cin, W*Cout)."""
    w_np = np.asarray(w_io, np.float32)
    cin, cout = w_np.shape
    blk = np.zeros((width * cin, width * cout), np.float32)
    for x in range(width):
        blk[x * cin:(x + 1) * cin, x * cout:(x + 1) * cout] = w_np
    return blk


def _fold_matrices(width, cout):
    """0/1 matrices mapping lane-folded (W*Cout) <-> per-channel (Cout)."""
    fold = np.zeros((width * cout, cout), np.float32)
    for x in range(width):
        fold[x * cout:(x + 1) * cout, :] = np.eye(cout, dtype=np.float32)
    return fold, fold.T.copy()


# ------------------------------- fused kernel ------------------------------- #
def resnet_block_kernel(*refs, has_downsample, n, h, w):
    if has_downsample:
        (x_ref, mtop_ref, mbot_ref, fold_ref, unfold_ref,
         w1_ref, g1_ref, be1_ref,
         w2_ref, g2_ref, be2_ref,
         wds_ref, gds_ref, beds_ref,
         o_ref) = refs
    else:
        (x_ref, mtop_ref, mbot_ref, fold_ref, unfold_ref,
         w1_ref, g1_ref, be1_ref,
         w2_ref, g2_ref, be2_ref,
         o_ref) = refs

    rows = n * h                        # sublane extent of the lane-folded layout
    inv_cnt = 1.0 / float(n * h * w)    # BN normalizer over (N,H,W)

    mtop = mtop_ref[...]                # (rows,1) f32: 0 where y == 0
    mbot = mbot_ref[...]                # (rows,1) f32: 0 where y == h-1
    fold = fold_ref[...]                # (w*cout, cout) f32
    unfold = unfold_ref[...]            # (cout, w*cout) f32

    def conv3x3(act, wblk_ref):
        """act: (rows, w*c) f32 lane-folded activation -> (rows, w*cout) f32."""
        # bf16 MXU operands, f32 accumulation.
        a_mid = act.astype(jnp.bfloat16)
        # dy = 0 tap reads image row y-1: roll down one row; mask rows with y == 0
        # (also kills the roll wrap-around and cross-batch rows) = vertical padding.
        a_dn = (pltpu.roll(act, 1, 0) * mtop).astype(jnp.bfloat16)
        # dy = 2 tap reads image row y+1: roll up one row; mask rows with y == h-1.
        a_up = (pltpu.roll(act, rows - 1, 0) * mbot).astype(jnp.bfloat16)
        y = jnp.dot(a_dn, wblk_ref[0], preferred_element_type=jnp.float32)
        y = y + jnp.dot(a_mid, wblk_ref[1], preferred_element_type=jnp.float32)
        y = y + jnp.dot(a_up, wblk_ref[2], preferred_element_type=jnp.float32)
        return y

    def bn(y, g_ref, b_ref):
        """Training-mode BN folded to per-channel scale/shift; stats kept in f32."""
        s1 = jnp.sum(y, axis=0, keepdims=True)              # (1, w*cout) f32
        s2 = jnp.sum(y * y, axis=0, keepdims=True)
        s1c = jnp.dot(s1, fold, preferred_element_type=jnp.float32)   # (1, cout)
        s2c = jnp.dot(s2, fold, preferred_element_type=jnp.float32)
        mean = s1c * inv_cnt
        var = s2c * inv_cnt - mean * mean                    # biased variance
        scale = g_ref[...] * jax.lax.rsqrt(var + _EPS)       # EUP
        shift = b_ref[...] - mean * scale
        scale_l = jnp.dot(scale, unfold, preferred_element_type=jnp.float32)
        shift_l = jnp.dot(shift, unfold, preferred_element_type=jnp.float32)
        return y * scale_l + shift_l                          # 2 VPU ops / element

    x2d = x_ref[...]                                          # (rows, w*cin) f32

    # conv1 (3x3, pad 1) -> BN -> ReLU   (conv bias cancelled by training-mode BN)
    y1 = conv3x3(x2d, w1_ref)
    h1 = jnp.maximum(bn(y1, g1_ref, be1_ref), 0.0)

    # conv2 (3x3, pad 1) -> BN
    y2 = conv3x3(h1, w2_ref)
    h2 = bn(y2, g2_ref, be2_ref)

    # shortcut
    if has_downsample:
        yds = jnp.dot(x2d.astype(jnp.bfloat16), wds_ref[...],
                      preferred_element_type=jnp.float32)
        identity = bn(yds, gds_ref, beds_ref)
    else:
        identity = x2d

    o_ref[...] = jnp.maximum(h2 + identity, 0.0).astype(o_ref.dtype)


# --------------------------------- wrapper ---------------------------------- #
def _padded_bytes(shape, itemsize):
    s = list(shape) if len(shape) >= 2 else [1] + list(shape)
    s[-1] = -(-s[-1] // 128) * 128
    sub = 8 if itemsize >= 4 else 16
    s[-2] = -(-s[-2] // sub) * sub
    return itemsize * math.prod(s)


def resnet_block(x, params, stride=1):
    """x: (N, H, W, Cin) float32, NHWC."""
    # TODO(synk): stride > 1 not implemented in the kernel.
    assert stride == 1
    n, h, w, cin = x.shape
    cout = params["w1"].shape[-1]
    has_ds = (cin != cout) or (stride != 1)
    rows = n * h

    bf16 = jnp.bfloat16
    row = lambda v: jnp.asarray(v, jnp.float32).reshape(1, -1)

    # Host-side prep: block-Toeplitz conv weights (bf16), fold/unfold matrices,
    # vertical-padding row masks, lane-folded input.
    w1blk = jnp.asarray(_conv3x3_block_weights(params["w1"], w), bf16)
    w2blk = jnp.asarray(_conv3x3_block_weights(params["w2"], w), bf16)
    foldm_np, unfoldm_np = _fold_matrices(w, cout)
    foldm = jnp.asarray(foldm_np)
    unfoldm = jnp.asarray(unfoldm_np)
    y_idx = np.arange(rows) % h
    mtop = jnp.asarray((y_idx != 0).astype(np.float32)[:, None])
    mbot = jnp.asarray((y_idx != h - 1).astype(np.float32)[:, None])
    x2d = x.astype(jnp.float32).reshape(rows, w * cin)

    args = [x2d, mtop, mbot, foldm, unfoldm,
            w1blk, row(params["g1"]), row(params["be1"]),
            w2blk, row(params["g2"]), row(params["be2"])]
    if has_ds:
        args += [jnp.asarray(_conv1x1_block_weight(params["wds"], w), bf16),
                 row(params["gds"]), row(params["beds"])]

    vmem_spec = pl.BlockSpec(memory_space=pltpu.MemorySpace.VMEM)

    # VMEM budget from actual (lane/sublane padded) buffers incl. the f32/bf16
    # activation-sized temporaries (y1/h1/y2, rolled bf16 slabs, identity, out);
    # clamped to 40 MiB to leave headroom on v7x's 64 MiB physical VMEM.
    est = sum(_padded_bytes(a.shape, a.dtype.itemsize) for a in args)
    est += _padded_bytes((rows, w * cout), 4)               # output
    est += 8 * _padded_bytes((rows, w * cout), 4)           # live temporaries
    vmem_limit = int(min(40 * 2**20, max(16 * 2**20, 4 * est)))

    flops = 2 * rows * (3 * (w * cin) * (w * cout) + 3 * (w * cout) * (w * cout)
                        + ((w * cin) * (w * cout) if has_ds else 0))
    bytes_accessed = sum(int(a.size) * a.dtype.itemsize for a in args) \
        + 4 * rows * w * cout

    out2d = pl.pallas_call(
        functools.partial(resnet_block_kernel, has_downsample=has_ds, n=n, h=h, w=w),
        out_shape=jax.ShapeDtypeStruct((rows, w * cout), x.dtype),
        in_specs=[vmem_spec] * len(args),
        out_specs=vmem_spec,
        compiler_params=pltpu.CompilerParams(vmem_limit_bytes=vmem_limit),
        cost_estimate=pl.CostEstimate(
            flops=int(flops),
            transcendentals=int((3 if has_ds else 2) * cout),
            bytes_accessed=int(bytes_accessed)),
    )(*args)

    return out2d.reshape(n, h, w, cout)


# -------------------------- parameters & reference -------------------------- #
def init_params(key, cin, cout, stride=1):
    k = jax.random.split(key, 3)
    lin = lambda a, b, m: jnp.linspace(a, b, m, dtype=jnp.float32)
    p = {
        "w1": 0.1 * jax.random.normal(k[0], (3, 3, cin, cout), jnp.float32),
        "b1": lin(-0.1, 0.1, cout), "g1": lin(0.9, 1.1, cout), "be1": lin(-0.05, 0.05, cout),
        "w2": 0.1 * jax.random.normal(k[1], (3, 3, cout, cout), jnp.float32),
        "b2": lin(-0.2, 0.2, cout), "g2": lin(1.1, 0.9, cout), "be2": lin(0.05, -0.05, cout),
    }
    if cin != cout or stride != 1:
        p.update({
            "wds": 0.1 * jax.random.normal(k[2], (cin, cout), jnp.float32),
            "bds": lin(-0.15, 0.15, cout), "gds": lin(0.95, 1.05, cout),
            "beds": lin(-0.02, 0.02, cout),
        })
    return p


def reference_block(x, params):
    """Pure-JAX f32 reference mirroring the PyTorch forward in training mode.

    Conv biases are kept here (nn.Conv2d default); the kernel drops them because
    training-mode BatchNorm cancels them exactly.
    """
    def conv3x3(inp, w, b):
        return jax.lax.conv_general_dilated(
            inp, w, window_strides=(1, 1), padding="SAME",
            dimension_numbers=("NHWC", "HWIO", "NHWC")) + b

    def bn(y, g, be):
        m = jnp.mean(y, axis=(0, 1, 2), keepdims=True)
        v = jnp.mean((y - m) ** 2, axis=(0, 1, 2), keepdims=True)
        return (y - m) * jax.lax.rsqrt(v + _EPS) * g + be

    h1 = jax.nn.relu(bn(conv3x3(x, params["w1"], params["b1"]), params["g1"], params["be1"]))
    h2 = bn(conv3x3(h1, params["w2"], params["b2"]), params["g2"], params["be2"])
    if "wds" in params:
        identity = bn(jnp.einsum("nhwc,cd->nhwd", x, params["wds"]) + params["bds"],
                      params["gds"], params["beds"])
    else:
        identity = x
    return jax.nn.relu(h2 + identity)


def _check(out, ref, name):
    # Kernel uses bf16 MXU operands (f32 accumulation); tolerances sized for
    # bf16 input rounding compounded over two convs + BN (outputs are O(1)).
    max_err = float(jnp.max(jnp.abs(out - ref)))
    mean_err = float(jnp.mean(jnp.abs(out - ref)))
    assert max_err < 1.5e-1 and mean_err < 3e-2, (name, max_err, mean_err)


# ------------------------------------ main ----------------------------------- #
if __name__ == "__main__":
    key = jax.random.PRNGKey(0)
    kx1, kx2, kp1, kp2 = jax.random.split(key, 4)

    # Case 1: in_channels != out_channels -> downsample (1x1 conv + BN) shortcut.
    # W * Cout = 16 * 8 = 128 -> lane-dense output stores.
    x1 = jax.random.normal(kx1, (2, 16, 16, 4), jnp.float32)
    p1 = init_params(kp1, cin=4, cout=8)
    out1 = jax.block_until_ready(resnet_block(x1, p1))
    assert out1.shape == (2, 16, 16, 8)
    _check(out1, reference_block(x1, p1), "downsample")

    # Case 2: in_channels == out_channels, stride 1 -> identity shortcut.
    x2 = jax.random.normal(kx2, (2, 16, 16, 8), jnp.float32)
    p2 = init_params(kp2, cin=8, cout=8)
    out2 = jax.block_until_ready(resnet_block(x2, p2))
    assert out2.shape == (2, 16, 16, 8)
    _check(out2, reference_block(x2, p2), "identity")

    print("KERNEL_OK")
</pallas_src>

<mosaic_0001>
module attributes {stable_mosaic.version = 11 : i64} {
  func.func @resnet_block_kernel(%arg0: memref<32x64xf32, #tpu.memory_space<vmem>>, %arg1: memref<32x1xf32, #tpu.memory_space<vmem>>, %arg2: memref<32x1xf32, #tpu.memory_space<vmem>>, %arg3: memref<128x8xf32, #tpu.memory_space<vmem>>, %arg4: memref<8x128xf32, #tpu.memory_space<vmem>>, %arg5: memref<3x64x128xbf16, #tpu.memory_space<vmem>>, %arg6: memref<1x8xf32, #tpu.memory_space<vmem>>, %arg7: memref<1x8xf32, #tpu.memory_space<vmem>>, %arg8: memref<3x128x128xbf16, #tpu.memory_space<vmem>>, %arg9: memref<1x8xf32, #tpu.memory_space<vmem>>, %arg10: memref<1x8xf32, #tpu.memory_space<vmem>>, %arg11: memref<64x128xbf16, #tpu.memory_space<vmem>>, %arg12: memref<1x8xf32, #tpu.memory_space<vmem>>, %arg13: memref<1x8xf32, #tpu.memory_space<vmem>>, %arg14: memref<32x128xf32, #tpu.memory_space<vmem>>) attributes {dimension_semantics = [], scalar_prefetch = 0 : i64, scratch_operands = 0 : i64, tpu.core_type = #tpu.core_type<tc>} {
    %c0 = arith.constant 0 : index
    %c0_0 = arith.constant 0 : index
    %0 = vector.load %arg1[%c0, %c0_0] : memref<32x1xf32, #tpu.memory_space<vmem>>, vector<32x1xf32>
    %c0_1 = arith.constant 0 : index
    %c0_2 = arith.constant 0 : index
    %1 = vector.load %arg2[%c0_1, %c0_2] : memref<32x1xf32, #tpu.memory_space<vmem>>, vector<32x1xf32>
    %c0_3 = arith.constant 0 : index
    %c0_4 = arith.constant 0 : index
    %2 = vector.load %arg3[%c0_3, %c0_4] : memref<128x8xf32, #tpu.memory_space<vmem>>, vector<128x8xf32>
    %c0_5 = arith.constant 0 : index
    %c0_6 = arith.constant 0 : index
    %3 = vector.load %arg4[%c0_5, %c0_6] : memref<8x128xf32, #tpu.memory_space<vmem>>, vector<8x128xf32>
    %c0_7 = arith.constant 0 : index
    %c0_8 = arith.constant 0 : index
    %4 = vector.load %arg0[%c0_7, %c0_8] : memref<32x64xf32, #tpu.memory_space<vmem>>, vector<32x64xf32>
    %5 = arith.truncf %4 : vector<32x64xf32> to vector<32x64xbf16>
    %c1_i32 = arith.constant 1 : i32
    %6 = tpu.dynamic_rotate %4 by %c1_i32 dim 0 : vector<32x64xf32>, i32 -> vector<32x64xf32>
    %7 = vector.broadcast %0 : vector<32x1xf32> to vector<32x64xf32>
    %8 = arith.mulf %6, %7 : vector<32x64xf32>
    %9 = arith.truncf %8 : vector<32x64xf32> to vector<32x64xbf16>
    %c31_i32 = arith.constant 31 : i32
    %10 = tpu.dynamic_rotate %4 by %c31_i32 dim 0 : vector<32x64xf32>, i32 -> vector<32x64xf32>
    %11 = vector.broadcast %1 : vector<32x1xf32> to vector<32x64xf32>
    %12 = arith.mulf %10, %11 : vector<32x64xf32>
    %13 = arith.truncf %12 : vector<32x64xf32> to vector<32x64xbf16>
    %c0_9 = arith.constant 0 : index
    %c0_10 = arith.constant 0 : index
    %c0_11 = arith.constant 0 : index
    %14 = vector.load %arg5[%c0_9, %c0_10, %c0_11] : memref<3x64x128xbf16, #tpu.memory_space<vmem>>, vector<1x64x128xbf16>
    %15 = vector.shape_cast %14 : vector<1x64x128xbf16> to vector<64x128xbf16>
    %cst = arith.constant dense<0.000000e+00> : vector<32x128xf32>
    %16 = tpu.matmul %9, %15, %cst {dimension_numbers = #tpu.dot_dimension_numbers<[1], [0], [0], [1], [0, 0, 1, 1], [], []>} : vector<32x64xbf16>, vector<64x128xbf16>, vector<32x128xf32> -> vector<32x128xf32>
    %c1 = arith.constant 1 : index
    %c0_12 = arith.constant 0 : index
    %c0_13 = arith.constant 0 : index
    %17 = vector.load %arg5[%c1, %c0_12, %c0_13] : memref<3x64x128xbf16, #tpu.memory_space<vmem>>, vector<1x64x128xbf16>
    %18 = vector.shape_cast %17 : vector<1x64x128xbf16> to vector<64x128xbf16>
    %cst_14 = arith.constant dense<0.000000e+00> : vector<32x128xf32>
    %19 = tpu.matmul %5, %18, %cst_14 {dimension_numbers = #tpu.dot_dimension_numbers<[1], [0], [0], [1], [0, 0, 1, 1], [], []>} : vector<32x64xbf16>, vector<64x128xbf16>, vector<32x128xf32> -> vector<32x128xf32>
    %20 = arith.addf %16, %19 : vector<32x128xf32>
    %c2 = arith.constant 2 : index
    %c0_15 = arith.constant 0 : index
    %c0_16 = arith.constant 0 : index
    %21 = vector.load %arg5[%c2, %c0_15, %c0_16] : memref<3x64x128xbf16, #tpu.memory_space<vmem>>, vector<1x64x128xbf16>
    %22 = vector.shape_cast %21 : vector<1x64x128xbf16> to vector<64x128xbf16>
    %cst_17 = arith.constant dense<0.000000e+00> : vector<32x128xf32>
    %23 = tpu.matmul %13, %22, %cst_17 {dimension_numbers = #tpu.dot_dimension_numbers<[1], [0], [0], [1], [0, 0, 1, 1], [], []>} : vector<32x64xbf16>, vector<64x128xbf16>, vector<32x128xf32> -> vector<32x128xf32>
    %24 = arith.addf %20, %23 : vector<32x128xf32>
    %cst_18 = arith.constant dense<0.000000e+00> : vector<128xf32>
    %25 = vector.multi_reduction <add>, %24, %cst_18 [0] : vector<32x128xf32> to vector<128xf32>
    %26 = vector.shape_cast %25 : vector<128xf32> to vector<1x128xf32>
    %27 = arith.mulf %24, %24 : vector<32x128xf32>
    %cst_19 = arith.constant dense<0.000000e+00> : vector<128xf32>
    %28 = vector.multi_reduction <add>, %27, %cst_19 [0] : vector<32x128xf32> to vector<128xf32>
    %29 = vector.shape_cast %28 : vector<128xf32> to vector<1x128xf32>
    %cst_20 = arith.constant dense<0.000000e+00> : vector<1x8xf32>
    %30 = tpu.matmul %26, %2, %cst_20 {dimension_numbers = #tpu.dot_dimension_numbers<[1], [0], [0], [1], [0, 0, 1, 1], [], []>} : vector<1x128xf32>, vector<128x8xf32>, vector<1x8xf32> -> vector<1x8xf32>
    %cst_21 = arith.constant dense<0.000000e+00> : vector<1x8xf32>
    %31 = tpu.matmul %29, %2, %cst_21 {dimension_numbers = #tpu.dot_dimension_numbers<[1], [0], [0], [1], [0, 0, 1, 1], [], []>} : vector<1x128xf32>, vector<128x8xf32>, vector<1x8xf32> -> vector<1x8xf32>
    %cst_22 = arith.constant 0.001953125 : f32
    %32 = vector.broadcast %cst_22 : f32 to vector<1x8xf32>
    %33 = arith.mulf %30, %32 : vector<1x8xf32>
    %cst_23 = arith.constant 0.001953125 : f32
    %34 = vector.broadcast %cst_23 : f32 to vector<1x8xf32>
    %35 = arith.mulf %31, %34 : vector<1x8xf32>
    %36 = arith.mulf %33, %33 : vector<1x8xf32>
    %37 = arith.subf %35, %36 : vector<1x8xf32>
    %c0_24 = arith.constant 0 : index
    %c0_25 = arith.constant 0 : index
    %38 = vector.load %arg6[%c0_24, %c0_25] : memref<1x8xf32, #tpu.memory_space<vmem>>, vector<1x8xf32>
    %cst_26 = arith.constant 9.99999974E-6 : f32
    %39 = vector.broadcast %cst_26 : f32 to vector<1x8xf32>
    %40 = arith.addf %37, %39 : vector<1x8xf32>
    %41 = math.rsqrt %40 : vector<1x8xf32>
    %42 = arith.mulf %38, %41 : vector<1x8xf32>
    %c0_27 = arith.constant 0 : index
    %c0_28 = arith.constant 0 : index
    %43 = vector.load %arg7[%c0_27, %c0_28] : memref<1x8xf32, #tpu.memory_space<vmem>>, vector<1x8xf32>
    %44 = arith.mulf %33, %42 : vector<1x8xf32>
    %45 = arith.subf %43, %44 : vector<1x8xf32>
    %cst_29 = arith.constant dense<0.000000e+00> : vector<1x128xf32>
    %46 = tpu.matmul %42, %3, %cst_29 {dimension_numbers = #tpu.dot_dimension_numbers<[1], [0], [0], [1], [0, 0, 1, 1], [], []>} : vector<1x8xf32>, vector<8x128xf32>, vector<1x128xf32> -> vector<1x128xf32>
    %cst_30 = arith.constant dense<0.000000e+00> : vector<1x128xf32>
    %47 = tpu.matmul %45, %3, %cst_30 {dimension_numbers = #tpu.dot_dimension_numbers<[1], [0], [0], [1], [0, 0, 1, 1], [], []>} : vector<1x8xf32>, vector<8x128xf32>, vector<1x128xf32> -> vector<1x128xf32>
    %48 = vector.broadcast %46 : vector<1x128xf32> to vector<32x128xf32>
    %49 = arith.mulf %24, %48 : vector<32x128xf32>
    %50 = vector.broadcast %47 : vector<1x128xf32> to vector<32x128xf32>
    %51 = arith.addf %49, %50 : vector<32x128xf32>
    %cst_31 = arith.constant 0.000000e+00 : f32
    %52 = vector.broadcast %cst_31 : f32 to vector<32x128xf32>
    %53 = arith.maximumf %51, %52 : vector<32x128xf32>
    %54 = arith.truncf %53 : vector<32x128xf32> to vector<32x128xbf16>
    %c1_i32_32 = arith.constant 1 : i32
    %55 = tpu.dynamic_rotate %53 by %c1_i32_32 dim 0 : vector<32x128xf32>, i32 -> vector<32x128xf32>
    %56 = vector.broadcast %0 : vector<32x1xf32> to vector<32x128xf32>
    %57 = arith.mulf %55, %56 : vector<32x128xf32>
    %58 = arith.truncf %57 : vector<32x128xf32> to vector<32x128xbf16>
    %c31_i32_33 = arith.constant 31 : i32
    %59 = tpu.dynamic_rotate %53 by %c31_i32_33 dim 0 : vector<32x128xf32>, i32 -> vector<32x128xf32>
    %60 = vector.broadcast %1 : vector<32x1xf32> to vector<32x128xf32>
    %61 = arith.mulf %59, %60 : vector<32x128xf32>
    %62 = arith.truncf %61 : vector<32x128xf32> to vector<32x128xbf16>
    %c0_34 = arith.constant 0 : index
    %c0_35 = arith.constant 0 : index
    %c0_36 = arith.constant 0 : index
    %63 = vector.load %arg8[%c0_34, %c0_35, %c0_36] : memref<3x128x128xbf16, #tpu.memory_space<vmem>>, vector<1x128x128xbf16>
    %64 = vector.shape_cast %63 : vector<1x128x128xbf16> to vector<128x128xbf16>
    %cst_37 = arith.constant dense<0.000000e+00> : vector<32x128xf32>
    %65 = tpu.matmul %58, %64, %cst_37 {dimension_numbers = #tpu.dot_dimension_numbers<[1], [0], [0], [1], [0, 0, 1, 1], [], []>} : vector<32x128xbf16>, vector<128x128xbf16>, vector<32x128xf32> -> vector<32x128xf32>
    %c1_38 = arith.constant 1 : index
    %c0_39 = arith.constant 0 : index
    %c0_40 = arith.constant 0 : index
    %66 = vector.load %arg8[%c1_38, %c0_39, %c0_40] : memref<3x128x128xbf16, #tpu.memory_space<vmem>>, vector<1x128x128xbf16>
    %67 = vector.shape_cast %66 : vector<1x128x128xbf16> to vector<128x128xbf16>
    %cst_41 = arith.constant dense<0.000000e+00> : vector<32x128xf32>
    %68 = tpu.matmul %54, %67, %cst_41 {dimension_numbers = #tpu.dot_dimension_numbers<[1], [0], [0], [1], [0, 0, 1, 1], [], []>} : vector<32x128xbf16>, vector<128x128xbf16>, vector<32x128xf32> -> vector<32x128xf32>
    %69 = arith.addf %65, %68 : vector<32x128xf32>
    %c2_42 = arith.constant 2 : index
    %c0_43 = arith.constant 0 : index
    %c0_44 = arith.constant 0 : index
    %70 = vector.load %arg8[%c2_42, %c0_43, %c0_44] : memref<3x128x128xbf16, #tpu.memory_space<vmem>>, vector<1x128x128xbf16>
    %71 = vector.shape_cast %70 : vector<1x128x128xbf16> to vector<128x128xbf16>
    %cst_45 = arith.constant dense<0.000000e+00> : vector<32x128xf32>
    %72 = tpu.matmul %62, %71, %cst_45 {dimension_numbers = #tpu.dot_dimension_numbers<[1], [0], [0], [1], [0, 0, 1, 1], [], []>} : vector<32x128xbf16>, vector<128x128xbf16>, vector<32x128xf32> -> vector<32x128xf32>
    %73 = arith.addf %69, %72 : vector<32x128xf32>
    %cst_46 = arith.constant dense<0.000000e+00> : vector<128xf32>
    %74 = vector.multi_reduction <add>, %73, %cst_46 [0] : vector<32x128xf32> to vector<128xf32>
    %75 = vector.shape_cast %74 : vector<128xf32> to vector<1x128xf32>
    %76 = arith.mulf %73, %73 : vector<32x128xf32>
    %cst_47 = arith.constant dense<0.000000e+00> : vector<128xf32>
    %77 = vector.multi_reduction <add>, %76, %cst_47 [0] : vector<32x128xf32> to vector<128xf32>
    %78 = vector.shape_cast %77 : vector<128xf32> to vector<1x128xf32>
    %cst_48 = arith.constant dense<0.000000e+00> : vector<1x8xf32>
    %79 = tpu.matmul %75, %2, %cst_48 {dimension_numbers = #tpu.dot_dimension_numbers<[1], [0], [0], [1], [0, 0, 1, 1], [], []>} : vector<1x128xf32>, vector<128x8xf32>, vector<1x8xf32> -> vector<1x8xf32>
    %cst_49 = arith.constant dense<0.000000e+00> : vector<1x8xf32>
    %80 = tpu.matmul %78, %2, %cst_49 {dimension_numbers = #tpu.dot_dimension_numbers<[1], [0], [0], [1], [0, 0, 1, 1], [], []>} : vector<1x128xf32>, vector<128x8xf32>, vector<1x8xf32> -> vector<1x8xf32>
    %cst_50 = arith.constant 0.001953125 : f32
    %81 = vector.broadcast %cst_50 : f32 to vector<1x8xf32>
    %82 = arith.mulf %79, %81 : vector<1x8xf32>
    %cst_51 = arith.constant 0.001953125 : f32
    %83 = vector.broadcast %cst_51 : f32 to vector<1x8xf32>
    %84 = arith.mulf %80, %83 : vector<1x8xf32>
    %85 = arith.mulf %82, %82 : vector<1x8xf32>
    %86 = arith.subf %84, %85 : vector<1x8xf32>
    %c0_52 = arith.constant 0 : index
    %c0_53 = arith.constant 0 : index
    %87 = vector.load %arg9[%c0_52, %c0_53] : memref<1x8xf32, #tpu.memory_space<vmem>>, vector<1x8xf32>
    %cst_54 = arith.constant 9.99999974E-6 : f32
    %88 = vector.broadcast %cst_54 : f32 to vector<1x8xf32>
    %89 = arith.addf %86, %88 : vector<1x8xf32>
    %90 = math.rsqrt %89 : vector<1x8xf32>
    %91 = arith.mulf %87, %90 : vector<1x8xf32>
    %c0_55 = arith.constant 0 : index
    %c0_56 = arith.constant 0 : index
    %92 = vector.load %arg10[%c0_55, %c0_56] : memref<1x8xf32, #tpu.memory_space<vmem>>, vector<1x8xf32>
    %93 = arith.mulf %82, %91 : vector<1x8xf32>
    %94 = arith.subf %92, %93 : vector<1x8xf32>
    %cst_57 = arith.constant dense<0.000000e+00> : vector<1x128xf32>
    %95 = tpu.matmul %91, %3, %cst_57 {dimension_numbers = #tpu.dot_dimension_numbers<[1], [0], [0], [1], [0, 0, 1, 1], [], []>} : vector<1x8xf32>, vector<8x128xf32>, vector<1x128xf32> -> vector<1x128xf32>
    %cst_58 = arith.constant dense<0.000000e+00> : vector<1x128xf32>
    %96 = tpu.matmul %94, %3, %cst_58 {dimension_numbers = #tpu.dot_dimension_numbers<[1], [0], [0], [1], [0, 0, 1, 1], [], []>} : vector<1x8xf32>, vector<8x128xf32>, vector<1x128xf32> -> vector<1x128xf32>
    %97 = vector.broadcast %95 : vector<1x128xf32> to vector<32x128xf32>
    %98 = arith.mulf %73, %97 : vector<32x128xf32>
    %99 = vector.broadcast %96 : vector<1x128xf32> to vector<32x128xf32>
    %100 = arith.addf %98, %99 : vector<32x128xf32>
    %101 = arith.truncf %4 : vector<32x64xf32> to vector<32x64xbf16>
    %c0_59 = arith.constant 0 : index
    %c0_60 = arith.constant 0 : index
    %102 = vector.load %arg11[%c0_59, %c0_60] : memref<64x128xbf16, #tpu.memory_space<vmem>>, vector<64x128xbf16>
    %cst_61 = arith.constant dense<0.000000e+00> : vector<32x128xf32>
    %103 = tpu.matmul %101, %102, %cst_61 {dimension_numbers = #tpu.dot_dimension_numbers<[1], [0], [0], [1], [0, 0, 1, 1], [], []>} : vector<32x64xbf16>, vector<64x128xbf16>, vector<32x128xf32> -> vector<32x128xf32>
    %cst_62 = arith.constant dense<0.000000e+00> : vector<128xf32>
    %104 = vector.multi_reduction <add>, %103, %cst_62 [0] : vector<32x128xf32> to vector<128xf32>
    %105 = vector.shape_cast %104 : vector<128xf32> to vector<1x128xf32>
    %106 = arith.mulf %103, %103 : vector<32x128xf32>
    %cst_63 = arith.constant dense<0.000000e+00> : vector<128xf32>
    %107 = vector.multi_reduction <add>, %106, %cst_63 [0] : vector<32x128xf32> to vector<128xf32>
    %108 = vector.shape_cast %107 : vector<128xf32> to vector<1x128xf32>
    %cst_64 = arith.constant dense<0.000000e+00> : vector<1x8xf32>
    %109 = tpu.matmul %105, %2, %cst_64 {dimension_numbers = #tpu.dot_dimension_numbers<[1], [0], [0], [1], [0, 0, 1, 1], [], []>} : vector<1x128xf32>, vector<128x8xf32>, vector<1x8xf32> -> vector<1x8xf32>
    %cst_65 = arith.constant dense<0.000000e+00> : vector<1x8xf32>
    %110 = tpu.matmul %108, %2, %cst_65 {dimension_numbers = #tpu.dot_dimension_numbers<[1], [0], [0], [1], [0, 0, 1, 1], [], []>} : vector<1x128xf32>, vector<128x8xf32>, vector<1x8xf32> -> vector<1x8xf32>
    %cst_66 = arith.constant 0.001953125 : f32
    %111 = vector.broadcast %cst_66 : f32 to vector<1x8xf32>
    %112 = arith.mulf %109, %111 : vector<1x8xf32>
    %cst_67 = arith.constant 0.001953125 : f32
    %113 = vector.broadcast %cst_67 : f32 to vector<1x8xf32>
    %114 = arith.mulf %110, %113 : vector<1x8xf32>
    %115 = arith.mulf %112, %112 : vector<1x8xf32>
    %116 = arith.subf %114, %115 : vector<1x8xf32>
    %c0_68 = arith.constant 0 : index
    %c0_69 = arith.constant 0 : index
    %117 = vector.load %arg12[%c0_68, %c0_69] : memref<1x8xf32, #tpu.memory_space<vmem>>, vector<1x8xf32>
    %cst_70 = arith.constant 9.99999974E-6 : f32
    %118 = vector.broadcast %cst_70 : f32 to vector<1x8xf32>
    %119 = arith.addf %116, %118 : vector<1x8xf32>
    %120 = math.rsqrt %119 : vector<1x8xf32>
    %121 = arith.mulf %117, %120 : vector<1x8xf32>
    %c0_71 = arith.constant 0 : index
    %c0_72 = arith.constant 0 : index
    %122 = vector.load %arg13[%c0_71, %c0_72] : memref<1x8xf32, #tpu.memory_space<vmem>>, vector<1x8xf32>
    %123 = arith.mulf %112, %121 : vector<1x8xf32>
    %124 = arith.subf %122, %123 : vector<1x8xf32>
    %cst_73 = arith.constant dense<0.000000e+00> : vector<1x128xf32>
    %125 = tpu.matmul %121, %3, %cst_73 {dimension_numbers = #tpu.dot_dimension_numbers<[1], [0], [0], [1], [0, 0, 1, 1], [], []>} : vector<1x8xf32>, vector<8x128xf32>, vector<1x128xf32> -> vector<1x128xf32>
    %cst_74 = arith.constant dense<0.000000e+00> : vector<1x128xf32>
    %126 = tpu.matmul %124, %3, %cst_74 {dimension_numbers = #tpu.dot_dimension_numbers<[1], [0], [0], [1], [0, 0, 1, 1], [], []>} : vector<1x8xf32>, vector<8x128xf32>, vector<1x128xf32> -> vector<1x128xf32>
    %127 = vector.broadcast %125 : vector<1x128xf32> to vector<32x128xf32>
    %128 = arith.mulf %103, %127 : vector<32x128xf32>
    %129 = vector.broadcast %126 : vector<1x128xf32> to vector<32x128xf32>
    %130 = arith.addf %128, %129 : vector<32x128xf32>
    %131 = arith.addf %100, %130 : vector<32x128xf32>
    %cst_75 = arith.constant 0.000000e+00 : f32
    %132 = vector.broadcast %cst_75 : f32 to vector<32x128xf32>
    %133 = arith.maximumf %131, %132 : vector<32x128xf32>
    %c0_76 = arith.constant 0 : index
    %c0_77 = arith.constant 0 : index
    %134 = vector.load %arg14[%c0_76, %c0_77] : memref<32x128xf32, #tpu.memory_space<vmem>>, vector<32x128xf32>
    tpu.vector_store %arg14[%c0_76, %c0_77], %133 {strides = array<i32>} : memref<32x128xf32, #tpu.memory_space<vmem>>, vector<32x128xf32>,
    return
  }
}

</mosaic_0001>

<bundles_post_ra>
// kernel: tpu_custom_call.1
= control target key start
LH: loop header
LB: loop body
LE: loop exit
PB: predicated region body
PF: predicated region fallthrough
CT: control target
= control target key end

     0   :  { %19 = vsyncpa [#allocation3], 0  ;;  %s3557_s0 = inlined_call_operand.vmem [shape: f32[32,64], index: 0, kind: input, shape index: {}]   ;;  %s3558_s1 = inlined_call_operand.vmem [shape: f32[32,1], index: 1, kind: input, shape index: {}]   ;;  %s3559_s2 = inlined_call_operand.vmem [shape: f32[32,1], index: 2, kind: input, shape index: {}]   ;;  %s3560_s3 = inlined_call_operand.vmem [shape: f32[128,8], index: 3, kind: input, shape index: {}]   ;;  %s3561_s4 = inlined_call_operand.vmem [shape: f32[8,128], index: 4, kind: input, shape index: {}]   ;;  %s3562_s5 = inlined_call_operand.hbm [shape: bf16[3,64,128], index: 5, kind: input, shape index: {}]   ;;  %s3563_s6 = inlined_call_operand.hbm [shape: f32[1,8], index: 6, kind: input, shape index: {}]   ;;  %s3564_s7 = inlined_call_operand.hbm [shape: f32[1,8], index: 7, kind: input, shape index: {}]   ;;  %s3565_s8 = inlined_call_operand.vmem [shape: bf16[3,128,128], index: 8, kind: input, shape index: {}]   ;;  %s3566_s9 = inlined_call_operand.vmem [shape: f32[1,8], index: 9, kind: input, shape index: {}]   ;;  %s3567_s10 = inlined_call_operand.vmem [shape: f32[1,8], index: 10, kind: input, shape index: {}]   ;;  %s3568_s11 = inlined_call_operand.hbm [shape: bf16[64,128], index: 11, kind: input, shape index: {}]   ;;  %s3569_s12 = inlined_call_operand.vmem [shape: f32[1,8], index: 12, kind: input, shape index: {}]   ;;  %s3570_s13 = inlined_call_operand.vmem [shape: f32[1,8], index: 13, kind: input, shape index: {}]   ;;  %s3571_s14 = inlined_call_operand.hbm [shape: f32[32,128], index: 14, kind: output, shape index: {}]  }
   0x1   :  { %20 = vsyncpa [#allocation6], 0 }
   0x2   :  { %21 = vsyncpa [#allocation9], 0 }
   0x3   :  { %22 = vsyncpa [#allocation4], 0  ;;  %s2909_s29 = smov [#allocation5]   ;;  %s2910_s15 = smov [#allocation2]  }
   0x4   :  { %s51_s30 = sshll.u32 %s2909_s29, 4  ;;  %s38_s16 = sshll.u32 %s2910_s15, 4  ;;  %s52_s30 = int_to_ptr.vmem [resolvable:$true] %s51_s30  ;;  %s2997_s16 = int_to_ptr.vmem [resolvable:$true] %s38_s16 }
   0x5   :  { %s2791_s19 = scalar_lea.hbm %s3563_s6, 16 }
   0x6   :  { %p2792_p0 = scmp.ne.s32.totalorder %s3563_s6, %s2791_s19  ;;  %p2795_p1 = scmp.lt.u32.totalorder %s2791_s19, %s3563_s6 }
   0x8   :  { %p2797_p2 = pnand %p2795_p1, %p2792_p0 }
   0xa   :  { %2800 = shalt.err (!%p2797_p2)
}
   0xb   :  { %s2801_s24 = scalar_lea.vmem %s52_s30, 16  ;;  %s2805_s25 = scalar_lea.vmem %s52_s30, 32 }
   0xc   :  { %p2802_p3 = scmp.ne.s32.totalorder %s52_s30, %s2801_s24  ;;  %p2806_p4 = scmp.lt.s32.totalorder %s52_s30, %s52_s30 }
   0xd   :  { %p2807_p5 = scmp.lt.s32.totalorder %s2805_s25, %s2801_s24 }
   0xf   :  { %p2808_p6 = por %p2807_p5, %p2806_p4 }
  0x11   :  { %p2809_p7 = pnand %p2808_p6, %p2802_p3 }
  0x13   :  { %2812 = shalt.err (!%p2809_p7)
}
  0x14   :  { %54 = dma.hbm_to_vmem [thread:$0]  %s3563_s6, 16, %s52_s30, [#allocation6]  }
  0x15   :  { %s2813_s15 = scalar_lea.hbm %s3562_s5, 1536 }
  0x16   :  { %p2814_p8 = scmp.ne.s32.totalorder %s3562_s5, %s2813_s15  ;;  %p2817_p9 = scmp.lt.u32.totalorder %s2813_s15, %s3562_s5 }
  0x18   :  { %p2819_p10 = pnand %p2817_p9, %p2814_p8 }
  0x1a   :  { %2822 = shalt.err (!%p2819_p10)
}
  0x1b   :  { %s2823_s21 = scalar_lea.vmem %s2997_s16, 1536  ;;  %p2828_p12 = scmp.lt.s32.totalorder %s2997_s16, %s2997_s16 }
  0x1c   :  { %p2824_p11 = scmp.ne.s32.totalorder %s2997_s16, %s2823_s21  ;;  %p2829_p13 = scmp.lt.s32.totalorder %s2823_s21, %s2823_s21 }
  0x1e   :  { %p2830_p0 = por %p2829_p13, %p2828_p12 }
  0x20   :  { %p2831_p1 = pnand %p2830_p0, %p2824_p11 }
  0x22   :  { %2834 = shalt.err (!%p2831_p1)
}
  0x23   :  { %s2911_s6 = smov 64   ;;  %s2912_s30 = smov 4  }
  0x24   :  { %44 = dma.hbm_to_vmem [thread:$0]  %s3562_s5, 1536, %s2997_s16, [#allocation3], %s2911_s6, %s2911_s6, %s2912_s30  }
  0x25   :  { %s2913_s24 = smov [#allocation7]   ;;  %s2914_s26 = smov [#allocation8]  }
  0x26   :  { %s61_s25 = sshll.u32 %s2913_s24, 4  ;;  %s76_s27 = sshll.u32 %s2914_s26, 4  ;;  %s62_s25 = int_to_ptr.vmem [resolvable:$true] %s61_s25  ;;  %s3031_s27 = int_to_ptr.vmem [resolvable:$true] %s76_s27 }
  0x27   :  { %s2835_s15 = scalar_lea.hbm %s3564_s7, 16 }
  0x28   :  { %p2836_p2 = scmp.ne.s32.totalorder %s3564_s7, %s2835_s15  ;;  %p2839_p3 = scmp.lt.u32.totalorder %s2835_s15, %s3564_s7 }
  0x2a   :  { %p2841_p4 = pnand %p2839_p3, %p2836_p2 }
  0x2c   :  { %2844 = shalt.err (!%p2841_p4)
}
  0x2d   :  { %s2845_s5 = scalar_lea.vmem %s62_s25, 16  ;;  %s2849_s16 = scalar_lea.vmem %s62_s25, 32 }
  0x2e   :  { %p2846_p5 = scmp.ne.s32.totalorder %s62_s25, %s2845_s5  ;;  %p2850_p6 = scmp.lt.s32.totalorder %s62_s25, %s62_s25 }
  0x2f   :  { %p2851_p7 = scmp.lt.s32.totalorder %s2849_s16, %s2845_s5 }
  0x31   :  { %p2852_p8 = por %p2851_p7, %p2850_p6 }
  0x33   :  { %p2853_p9 = pnand %p2852_p8, %p2846_p5 }
  0x35   :  { %2856 = shalt.err (!%p2853_p9)
}
  0x36   :  { %64 = dma.hbm_to_vmem [thread:$0]  %s3564_s7, 16, %s62_s25, [#allocation6]  }
  0x37   :  { %s2857_s26 = scalar_lea.hbm %s3568_s11, 512 }
  0x38   :  { %p2858_p10 = scmp.ne.s32.totalorder %s3568_s11, %s2857_s26  ;;  %p2861_p11 = scmp.lt.u32.totalorder %s2857_s26, %s3568_s11 }
  0x3a   :  { %p2863_p12 = pnand %p2861_p11, %p2858_p10 }
  0x3c   :  { %2866 = shalt.err (!%p2863_p12)
}
  0x3d   :  { %s2867_s18 = scalar_lea.vmem %s3031_s27, 512  ;;  %p2872_p0 = scmp.lt.s32.totalorder %s3031_s27, %s3031_s27 }
  0x3e   :  { %p2868_p13 = scmp.ne.s32.totalorder %s3031_s27, %s2867_s18  ;;  %p2873_p1 = scmp.lt.s32.totalorder %s2867_s18, %s2867_s18 }
  0x40   :  { %p2874_p2 = por %p2873_p1, %p2872_p0 }
  0x42   :  { %p2875_p3 = pnand %p2874_p2, %p2868_p13 }
  0x44   :  { %2878 = shalt.err (!%p2875_p3)
}
  0x45   :  { %82 = dma.hbm_to_vmem [thread:$0]  %s3568_s11, 512, %s3031_s27, [#allocation9], %s2911_s6, %s2911_s6, %s2912_s30  }
  0x46   :  { %2901 = dma.done.wait [#allocation3], 1536  }
  0x47   :  { %2902 = vsyncadd [#allocation3], 4294965760 }
  0x48   :  { %2903 = dma.done.wait [#allocation6], 32  }
  0x49   :  { %2904 = vsyncadd [#allocation6], 4294967264 }
  0x4a   :  { %2905 = dma.done.wait [#allocation9], 512  }
  0x4b   :  { %2906 = vsyncadd [#allocation9], 4294966784  ;;  %v2915_v0 = vmov 0   ;;  %v135_v1 = vlaneseq  ;;  %v102_v2 = vld [vmem:[%s3558_s1 + $0x10] sm:$0xff]  ;;  %v100_v3 = vld [vmem:[%s3558_s1] sm:$0xff]  ;;  %vm244_vm0 = vcmask 523264  }
  0x4c   :  { %2744 = vset.pattern.permute.xlu1 %v2915_v0  ;;  %2743 = vset.pattern.permute.xlu0 %v2915_v0  ;;  %v103_v4 = vld [vmem:[%s3558_s1 + $0x18] sm:$0xff]  ;;  %v101_v5 = vld [vmem:[%s3558_s1 + $0x8] sm:$0xff]  ;;  %v2745_v6 = vld [vmem:[#allocation2 + $0x20] sm:$0xff]   ;;  %v2916_v44 = vmov 0.0|0.0   ;;  %vm2917_vm3 = vmmov 0   ;;  %vm644_vm4 = vcmask 64512  }
  0x4d   :  { %154 = vperm.xlu1 %2744, %v102_v2   ;;  %144 = vperm.xlu0 %2743, %v100_v3   ;;  %v3077_v7 = vshrl.u32 %v135_v1, 7  ;;  %v2746_v8 = vld [vmem:[#allocation2 + $0x28] sm:$0xff]   ;;  %v104_v10 = vld [vmem:[%s3559_s2] sm:$0xff]  ;;  %v2747_v12 = vld [vmem:[#allocation2 + $0x30] sm:$0xff]  }
  0x4e   :  { %v105_v9 = vld [vmem:[%s3559_s2 + $0x8] sm:$0xff]  ;;  %2222 = vmatprep.subr.bf16.mxu0 %v2745_v6  ;;  %v125_v11 = vld [vmem:[%s3557_s0] sm:$0xff]  ;;  %v107_v15 = vld [vmem:[%s3559_s2 + $0x18] sm:$0xff]  ;;  %2570 = vmatprep.subr.bf16.mxu1 %v2916_v44 }
  0x4f   :  { %2223 = vmatpush3.bf16.msra.mxu0 %v2745_v6  ;;  %v126_v13 = vld [vmem:[%s3557_s0 + $0x8] sm:$0xff]  ;;  %v131_v14 = vrot.slane %v125_v11, 7  ;;  %vm137_vm1 = vcmp.lt.s32.totalorder %v3077_v7, 1  ;;  %v168_v18 = vrot.slane %v125_v11, 1  ;;  %v127_v20 = vld [vmem:[%s3557_s0 + $0x10] sm:$0xff]  ;;  %v128_v21 = vld [vmem:[%s3557_s0 + $0x18] sm:$0xff] }
  0x50   :  { %2224 = vmatprep.subr.bf16.mxu0 %v2746_v8  ;;  %v3095_v16 = vpack.c.bf16 %v126_v13, %v125_v11  ;;  %v132_v17 = vrot.slane %v126_v13, 7  ;;  %v169_v19 = vrot.slane %v126_v13, 1  ;;  %v133_v22 = vrot.slane %v127_v20, 7  ;;  %v106_v23 = vld [vmem:[%s3559_s2 + $0x10] sm:$0xff]  ;;  %v2748_v28 = vld [vmem:[#allocation2 + $0x38] sm:$0xff]   ;;  %v2749_v34 = vld [vmem:[#allocation2] sm:$0xff]  }
  0x51   :  { %159 = vperm.xlu1 %2744, %v103_v4   ;;  %149 = vperm.xlu0 %2743, %v101_v5   ;;  %v134_v24 = vrot.slane %v128_v21, 7  ;;  %v170_v27 = vrot.slane %v127_v20, 1  ;;  %vm172_vm2 = vcmp.lt.s32.totalorder %v3077_v7, 7  ;;  %v171_v33 = vrot.slane %v128_v21, 1  ;;  %v2750_v38 = vld [vmem:[#allocation2 + $0x8] sm:$0xff]   ;;  %v2751_v39 = vld [vmem:[#allocation2 + $0x10] sm:$0xff]  }
  0x52   :  { %2230 = vmatprep.mubr.msk.bf16.mxu0 %vm244_vm0, %v3095_v16  ;;  %v140_v25 = vsel %vm137_vm1, %v131_v14, %v132_v17  ;;  %v139_v26 = vsel %vm137_vm1, %v132_v17, %v133_v22  ;;  %v175_v32 = vsel %vm172_vm2, %v168_v18, %v169_v19  ;;  %v3125_v37 = vpack.c.bf16 %v128_v21, %v127_v20  ;;  %v108_v40 = vld [vmem:[%s3560_s3] sm:$0xff]  ;;  %v109_v41 = vld [vmem:[%s3560_s3 + $0x8] sm:$0xff]  ;;  %v110_v42 = vld [vmem:[%s3560_s3 + $0x10] sm:$0xff] }
  0x53   :  { %2225 = vmatpush3.bf16.msra.mxu0 %v2746_v8  ;;  %v141_v29 = vsel %vm137_vm1, %v134_v24, %v131_v14  ;;  %v138_v30 = vsel %vm137_vm1, %v133_v22, %v134_v24  ;;  %v174_v31 = vsel %vm172_vm2, %v169_v19, %v170_v27  ;;  %v176_v35 = vsel %vm172_vm2, %v171_v33, %v168_v18  ;;  %v2752_v43 = vld [vmem:[#allocation2 + $0x18] sm:$0xff]   ;;  %v112_v47 = vld [vmem:[%s3560_s3 + $0x20] sm:$0xff]  ;;  %v113_v48 = vld [vmem:[%s3560_s3 + $0x28] sm:$0xff] }
  0x54   :  { %2226 = vmatprep.subr.bf16.mxu0 %v2747_v12  ;;  %v173_v36 = vsel %vm172_vm2, %v170_v27, %v171_v33  ;;  %v3139_v45 = vpack.c.bf16 %v109_v41, %v108_v40  ;;  %v111_v46 = vld [vmem:[%s3560_s3 + $0x18] sm:$0xff]  ;;  %v2753_v50 = vld [vmem:[#allocation2 + $0x40] sm:$0xff]   ;;  %v3155_v51 = vpack.c.bf16 %v113_v48, %v112_v47  ;;  %v2754_v0 = vld [vmem:[#allocation2 + $0x48] sm:$0xff]   ;;  %v2918_v27 = vmov 0.0  }
  0x55   :  { %184 = vperm.xlu1 %2744, %v105_v9   ;;  %179 = vperm.xlu0 %2743, %v104_v10   ;;  %v3151_v49 = vpack.c.bf16 %v111_v46, %v110_v42  ;;  %v2755_v6 = vld [vmem:[#allocation2 + $0x50] sm:$0xff]   ;;  %v2756_v11 = vld [vmem:[#allocation2 + $0x58] sm:$0xff]   ;;  %v117_v17 = vld [vmem:[%s3560_s3 + $0x48] sm:$0xff] }
  0x56   :  { %2572 = vmatpush3.bf16.msra.mxu1 %v3139_v45  ;;  %v115_v13 = vld [vmem:[%s3560_s3 + $0x38] sm:$0xff]  ;;  %v118_v19 = vld [vmem:[%s3560_s3 + $0x50] sm:$0xff]  ;;  %v120_v22 = vld [vmem:[%s3560_s3 + $0x60] sm:$0xff]  ;;  %2290 = vmatprep.mubr.msk.f32.mxu1 %vm2917_vm3, %v2918_v27 }
  0x57   :  { %2227 = vmatpush3.bf16.msra.mxu0 %v2747_v12  ;;  %2573 = vmatprep.subr.bf16.mxu1 %v2916_v44  ;;  %v114_v12 = vld [vmem:[%s3560_s3 + $0x30] sm:$0xff]  ;;  %v119_v20 = vld [vmem:[%s3560_s3 + $0x58] sm:$0xff] }
  0x58   :  { %2228 = vmatprep.subr.bf16.mxu0 %v2748_v28  ;;  %v3194_v14 = vpack.c.bf16 %v115_v13, %v114_v12  ;;  %v3214_v21 = vpack.c.bf16 %v119_v20, %v118_v19 }
  0x59   :  { %194 = vperm.xlu1 %2744, %v107_v15   ;;  %189 = vperm.xlu0 %2743, %v106_v23   ;;  %v116_v15 = vld [vmem:[%s3560_s3 + $0x40] sm:$0xff]  ;;  %v121_v23 = vld [vmem:[%s3560_s3 + $0x68] sm:$0xff] }
  0x5a   :  { %2575 = vmatpush3.bf16.msra.mxu1 %v3151_v49  ;;  %v3204_v18 = vpack.c.bf16 %v117_v17, %v116_v15  ;;  %v3224_v24 = vpack.c.bf16 %v121_v23, %v120_v22  ;;  %v637_v17 = vld [vmem:[#allocation5] sm:$0x1]  ;;  %v641_v23 = vld [vmem:[#allocation7] sm:$0x1] }
  0x5b   :  { %2229 = vmatpush3.bf16.msra.mxu0 %v2748_v28  ;;  %2576 = vmatprep.subr.bf16.mxu1 %v2916_v44  ;;  %v2757_v22 = vld [vmem:[%s3565_s8 + $0x40] sm:$0xff]  }
  0x5c   :  { %2234 = vmatprep.subr.bf16.mxu0 %v2749_v34 }
  0x5e   :  { %2231 = vmatmul.mubr.msk.bf16.vlgmr.msra.gmra.mrb[0].mxu0 %vm244_vm0, %v3125_v37  ;;  %2578 = vmatpush3.bf16.msra.mxu1 %v3155_v51 }
  0x5f   :  { %2235 = vmatpush3.bf16.msra.mxu0 %v2749_v34  ;;  %2579 = vmatprep.subr.bf16.mxu1 %v2916_v44 }
  0x60   :  { %2236 = vmatprep.subr.bf16.mxu0 %v2750_v38 }
  0x62   :  { %2581 = vmatpush3.bf16.msra.mxu1 %v3194_v14 }
  0x63   :  { %2237 = vmatpush3.bf16.msra.mxu0 %v2750_v38  ;;  %2582 = vmatprep.subr.bf16.mxu1 %v2916_v44 }
  0x64   :  { %2238 = vmatprep.subr.bf16.mxu0 %v2751_v39 }
  0x66   :  { %2584 = vmatpush3.bf16.msra.mxu1 %v3204_v18 }
  0x67   :  { %2239 = vmatpush3.bf16.msra.mxu0 %v2751_v39  ;;  %2585 = vmatprep.subr.bf16.mxu1 %v2916_v44 }
  0x68   :  { %2240 = vmatprep.subr.bf16.mxu0 %v2752_v43 }
  0x6a   :  { %2587 = vmatpush3.bf16.msra.mxu1 %v3214_v21 }
  0x6b   :  { %2241 = vmatpush3.bf16.msra.mxu0 %v2752_v43  ;;  %2588 = vmatprep.subr.bf16.mxu1 %v2916_v44 }
  0x6c   :  { %2246 = vmatprep.subr.bf16.mxu0 %v2753_v50 }
  0x6e   :  { %2590 = vmatpush3.bf16.msra.mxu1 %v3224_v24 }
  0x6f   :  { %2591 = vmatprep.subr.bf16.mxu1 %v2916_v44 }
  0xcc   :  { %v3160_v52 = vpop.permute.xlu1 %154  ;;  %v3162_v53 = vpop.permute.xlu0 %144 }
  0xcd   :  { %v164_v56 = vmul.f32 %v3160_v52, %v139_v26  ;;  %v162_v57 = vmul.f32 %v3162_v53, %v141_v29  ;;  %v123_v26 = vld [vmem:[%s3560_s3 + $0x78] sm:$0xff] }
  0xd0   :  { %v3164_v54 = vpop.permute.xlu1 %159  ;;  %v3166_v55 = vpop.permute.xlu0 %149 }
  0xd1   :  { %v165_v58 = vmul.f32 %v3164_v54, %v138_v30  ;;  %v163_v59 = vmul.f32 %v3166_v55, %v140_v25  ;;  %v122_v25 = vld [vmem:[%s3560_s3 + $0x70] sm:$0xff] }
  0xd2   :  { %v3236_v28 = vpack.c.bf16 %v123_v26, %v122_v25 }
  0xd3   :  { %v167_v60 = vpack.c.bf16 %v165_v58, %v164_v56  ;;  %v166_v61 = vpack.c.bf16 %v163_v59, %v162_v57 }
  0xd4   :  { %v3172_v62 = vpop.permute.xlu1 %184  ;;  %v3174_v63 = vpop.permute.xlu0 %179  ;;  %2593 = vmatpush3.bf16.msra.mxu1 %v3236_v28 }
  0xd5   :  { %v198_v1 = vmul.f32 %v3172_v62, %v174_v31  ;;  %v197_v2 = vmul.f32 %v3174_v63, %v175_v32  ;;  %2242 = vmatprep.mubr.msk.bf16.mxu0 %vm244_vm0, %v166_v61  ;;  %2594 = vmatprep.subr.bf16.mxu1 %v2916_v44 }
  0xd6   :  { %2243 = vmatmul.mubr.msk.bf16.vlgmr.msra.gmra.mrb[0].mxu0 %vm244_vm0, %v167_v60 }
  0xd7   :  { %v201_v3 = vpack.c.bf16 %v198_v1, %v197_v2  ;;  %2247 = vmatpush3.bf16.msra.mxu0 %v2753_v50  ;;  %v3302_v2 = vld [vmem:[%s3561_s4] sm:$0xff] }
  0xd8   :  { %v3180_v4 = vpop.permute.xlu1 %194  ;;  %v3182_v5 = vpop.permute.xlu0 %189  ;;  %2248 = vmatprep.subr.bf16.mxu0 %v2754_v0 }
  0xd9   :  { %v200_v8 = vmul.f32 %v3180_v4, %v176_v35  ;;  %v199_v9 = vmul.f32 %v3182_v5, %v173_v36  ;;  %2254 = vmatprep.mubr.msk.bf16.mxu0 %vm244_vm0, %v201_v3 }
  0xdb   :  { %v202_v10 = vpack.c.bf16 %v200_v8, %v199_v9  ;;  %2249 = vmatpush3.bf16.msra.mxu0 %v2754_v0 }
  0xdc   :  { %2250 = vmatprep.subr.bf16.mxu0 %v2755_v6 }
  0xdf   :  { %2251 = vmatpush3.bf16.msra.mxu0 %v2755_v6 }
  0xe0   :  { %2252 = vmatprep.subr.bf16.mxu0 %v2756_v11 }
  0xe3   :  { %2253 = vmatpush3.bf16.msra.mxu0 %v2756_v11 }
  0xe4   :  { %2328 = vmatprep.subr.mxu0 %v2918_v27 }
  0xe6   :  { %2255 = vmatmul.mubr.msk.bf16.vlgmr.msra.gmra.mrb[0].mxu0 %vm244_vm0, %v202_v10 }
  0xe7   :  { %2330 = vmatprep.mubr.msk.f32.mxu0 %vm2917_vm3, %v2918_v27  ;;  %2329 = vmatpush3.msra.mxu0 %v3302_v2 }
  0xe8   :  { %2333 = vmatprep.subr.mxu0 %v2918_v27 }
 0x1b9   :  { %v3243_v29 = vpop.f32.mrb[0].mxu0 }
 0x1ba   :  { %v3245_v30 = vpop.f32.mrb[1].mxu0  ;;  %v482_v36 = vmul.f32 %v3243_v29, %v3243_v29 }
 0x1bb   :  { %v3247_v31 = vpop.f32.mrb[2].mxu0  ;;  %v480_v33 = vmul.f32 %v3245_v30, %v3245_v30 }
 0x1bc   :  { %v3249_v32 = vpop.f32.mrb[3].mxu0  ;;  %v483_v40 = vmul.f32 %v3247_v31, %v3247_v31 }
 0x1bd   :  { %v471_v34 = vadd.f32 %v3249_v32, %v3245_v30  ;;  %v481_v35 = vmul.f32 %v3249_v32, %v3249_v32 }
 0x1bf   :  { %v472_v38 = vadd.f32 %v3243_v29, %v471_v34  ;;  %v484_v39 = vadd.f32 %v481_v35, %v480_v33  ;;  %v2758_v33 = vld [vmem:[%s3565_s8 + $0x48] sm:$0xff]   ;;  %v2759_v34 = vld [vmem:[%s3565_s8 + $0x50] sm:$0xff]   ;;  %v2760_v35 = vld [vmem:[%s3565_s8 + $0x58] sm:$0xff]  }
 0x1c1   :  { %v473_v41 = vadd.f32 %v3247_v31, %v472_v38  ;;  %v485_v42 = vadd.f32 %v484_v39, %v482_v36  ;;  %v2761_v36 = vld [vmem:[%s3565_s8 + $0x60] sm:$0xff]   ;;  %v2762_v38 = vld [vmem:[%s3565_s8 + $0x68] sm:$0xff]   ;;  %v2763_v39 = vld [vmem:[%s3565_s8 + $0x70] sm:$0xff]  }
 0x1c3   :  { %v474_v43 = vrot.slane %v473_v41, 4  ;;  %v486_v46 = vadd.f32 %v485_v42, %v483_v40  ;;  %v2764_v40 = vld [vmem:[%s3565_s8 + $0x78] sm:$0xff]   ;;  %v3339_v42 = vsub.s32 0, %v3077_v7 }
 0x1c5   :  { %v475_v47 = vadd.f32 %v474_v43, %v473_v41  ;;  %v487_v58 = vrot.slane %v486_v46, 4  ;;  %v2765_v41 = vld [vmem:[%s3565_s8] sm:$0xff]  }
 0x1c7   :  { %v476_v48 = vrot.slane %v475_v47, 2  ;;  %v488_v59 = vadd.f32 %v487_v58, %v486_v46 }
 0x1c9   :  { %v477_v50 = vadd.f32 %v476_v48, %v475_v47  ;;  %v489_v60 = vrot.slane %v488_v59, 2 }
 0x1cb   :  { %v478_v56 = vrot.slane %v477_v50, 1  ;;  %v490_v61 = vadd.f32 %v489_v60, %v488_v59 }
 0x1cd   :  { %v479_v57 = vadd.f32 %v478_v56, %v477_v50  ;;  %v491_v0 = vrot.slane %v490_v61, 1 }
 0x1cf   :  { %2291 = vmatmul.mubr.f32.vlgmr.msra.gmra.mrb[0].mxu1 %v479_v57  ;;  %v492_v1 = vadd.f32 %v491_v0, %v490_v61 }
 0x1d0   :  { %2596 = vmatpush3.bf16.msra.mxu1 %v3139_v45  ;;  %2325 = vmatprep.mubr.msk.f32.mxu1 %vm2917_vm3, %v2918_v27 }
 0x1d1   :  { %2597 = vmatprep.subr.bf16.mxu1 %v2916_v44 }
 0x1d4   :  { %2599 = vmatpush3.bf16.msra.mxu1 %v3151_v49 }
 0x1d5   :  { %2600 = vmatprep.subr.bf16.mxu1 %v2916_v44 }
 0x1d8   :  { %2602 = vmatpush3.bf16.msra.mxu1 %v3155_v51 }
 0x1d9   :  { %2603 = vmatprep.subr.bf16.mxu1 %v2916_v44 }
 0x1dc   :  { %2605 = vmatpush3.bf16.msra.mxu1 %v3194_v14 }
 0x1dd   :  { %2606 = vmatprep.subr.bf16.mxu1 %v2916_v44 }
 0x1e0   :  { %2608 = vmatpush3.bf16.msra.mxu1 %v3204_v18 }
 0x1e1   :  { %2609 = vmatprep.subr.bf16.mxu1 %v2916_v44 }
 0x1e4   :  { %2611 = vmatpush3.bf16.msra.mxu1 %v3214_v21 }
 0x1e5   :  { %2612 = vmatprep.subr.bf16.mxu1 %v2916_v44 }
 0x1e8   :  { %2614 = vmatpush3.bf16.msra.mxu1 %v3224_v24 }
 0x1e9   :  { %2615 = vmatprep.subr.bf16.mxu1 %v2916_v44 }
 0x1ec   :  { %2617 = vmatpush3.bf16.msra.mxu1 %v3236_v28 }
 0x1ed   :  { %2618 = vmatprep.subr.bf16.mxu1 %v2916_v44 }
 0x1ef   :  { %2326 = vmatmul.mubr.f32.vlgmr.msra.gmra.mrb[2].mxu1 %v492_v1 }
 0x1f0   :  { %2620 = vmatpush3.bf16.msra.mxu1 %v3139_v45  ;;  %2430 = vmatprep.mubr.msk.f32.mxu1 %vm2917_vm3, %v2918_v27 }
 0x1f1   :  { %2621 = vmatprep.subr.bf16.mxu1 %v2916_v44 }
 0x1f4   :  { %2623 = vmatpush3.bf16.msra.mxu1 %v3151_v49 }
 0x1f5   :  { %2624 = vmatprep.subr.bf16.mxu1 %v2916_v44 }
 0x1f8   :  { %2626 = vmatpush3.bf16.msra.mxu1 %v3155_v51 }
 0x1f9   :  { %2627 = vmatprep.subr.bf16.mxu1 %v2916_v44 }
 0x1fc   :  { %2629 = vmatpush3.bf16.msra.mxu1 %v3194_v14 }
 0x1fd   :  { %2630 = vmatprep.subr.bf16.mxu1 %v2916_v44 }
 0x200   :  { %2632 = vmatpush3.bf16.msra.mxu1 %v3204_v18 }
 0x201   :  { %2633 = vmatprep.subr.bf16.mxu1 %v2916_v44 }
 0x204   :  { %2635 = vmatpush3.bf16.msra.mxu1 %v3214_v21 }
 0x205   :  { %2636 = vmatprep.subr.bf16.mxu1 %v2916_v44 }
 0x208   :  { %2638 = vmatpush3.bf16.msra.mxu1 %v3224_v24 }
 0x209   :  { %2639 = vmatprep.subr.bf16.mxu1 %v2916_v44 }
 0x20c   :  { %2641 = vmatpush3.bf16.msra.mxu1 %v3236_v28 }
 0x20d   :  { %2642 = vmatprep.subr.bf16.mxu1 %v2916_v44 }
 0x2a2   :  { %v559_v3 = vpop.f32.mrb[0].mxu1 }
 0x2a3   :  { %v2292_v6 = vpop.f32.mrb[1].mxu1  ;;  %v633_v8 = vmul.f32 0.001953125, %v559_v3 }
 0x2a5   :  { %v635_v10 = vmul.f32 %v633_v8, %v633_v8 }
 0x2c2   :  { %v629_v9 = vpop.f32.mrb[2].mxu1 }
 0x2c3   :  { %v634_v11 = vmul.f32 0.001953125, %v629_v9  ;;  %v2327_v12 = vpop.f32.mrb[3].mxu1 }
 0x2c5   :  { %v636_v13 = vsub.f32 %v634_v11, %v635_v10 }
 0x2c7   :  { %v638_v15 = vadd.f32 1e-05, %v636_v13 }
 0x2c9   :  { %2785 = vrsqrt.f32 %v638_v15 }
 0x2d3   :  { %v2786_v19 = vpop.eup %2785 }
 0x2d4   :  { %v640_v20 = vmul.f32 %v2786_v19, %v637_v17 }
 0x2d6   :  { %2331 = vmatmul.mubr.msk.f32.vlgmr.msra.gmra.mrb[4].mxu0 %vm644_vm4, %v640_v20  ;;  %v642_v25 = vmul.f32 %v640_v20, %v633_v8 }
 0x2d7   :  { %2334 = vmatpush3.msra.mxu0 %v3302_v2  ;;  %2335 = vmatprep.mubr.msk.f32.mxu0 %vm2917_vm3, %v2918_v27 }
 0x2d8   :  { %v643_v26 = vsub.f32 %v641_v23, %v642_v25  ;;  %2338 = vmatprep.subr.bf16.mxu0 %v2757_v22 }
 0x2da   :  { %2336 = vmatmul.mubr.msk.f32.vlgmr.msra.gmra.mrb[6].mxu0 %vm644_vm4, %v643_v26 }
 0x2db   :  { %2339 = vmatpush3.bf16.msra.mxu0 %v2757_v22 }
 0x2dc   :  { %2340 = vmatprep.subr.bf16.mxu0 %v2758_v33 }
 0x2df   :  { %2341 = vmatpush3.bf16.msra.mxu0 %v2758_v33 }
 0x2e0   :  { %2342 = vmatprep.subr.bf16.mxu0 %v2759_v34 }
 0x2e3   :  { %2343 = vmatpush3.bf16.msra.mxu0 %v2759_v34 }
 0x2e4   :  { %2344 = vmatprep.subr.bf16.mxu0 %v2760_v35 }
 0x2e7   :  { %2345 = vmatpush3.bf16.msra.mxu0 %v2760_v35 }
 0x2e8   :  { %2346 = vmatprep.subr.bf16.mxu0 %v2761_v36 }
 0x2eb   :  { %2347 = vmatpush3.bf16.msra.mxu0 %v2761_v36 }
 0x2ec   :  { %2348 = vmatprep.subr.bf16.mxu0 %v2762_v38 }
 0x2ef   :  { %2349 = vmatpush3.bf16.msra.mxu0 %v2762_v38  ;;  %v2767_v38 = vld [vmem:[%s3565_s8 + $0x10] sm:$0xff]  }
 0x2f0   :  { %2350 = vmatprep.subr.bf16.mxu0 %v2763_v39 }
 0x2f3   :  { %2351 = vmatpush3.bf16.msra.mxu0 %v2763_v39 }
 0x2f4   :  { %2352 = vmatprep.subr.bf16.mxu0 %v2764_v40 }
 0x2f7   :  { %2353 = vmatpush3.bf16.msra.mxu0 %v2764_v40 }
 0x2f8   :  { %2358 = vmatprep.subr.bf16.mxu0 %v2765_v41 }
 0x3a9   :  { %v714_v43 = vpop.f32.mrb[4].mxu0 }
 0x3aa   :  { %v794_v46 = vrot.slane %v714_v43, %v3339_v42  ;;  %v2332_v47 = vpop.f32.mrb[5].mxu0 }
 0x3ac   :  { %v795_v48 = vmul.f32 %v794_v46, %v3245_v30  ;;  %v796_v50 = vmul.f32 %v794_v46, %v3249_v32  ;;  %v797_v56 = vmul.f32 %v3243_v29, %v794_v46  ;;  %v798_v57 = vmul.f32 %v3247_v31, %v794_v46  ;;  %v2766_v29 = vld [vmem:[%s3565_s8 + $0x8] sm:$0xff]  }
 0x3ad   :  { %v787_v58 = vpop.f32.mrb[6].mxu0 }
 0x3ae   :  { %v802_v59 = vrot.slane %v787_v58, %v3339_v42  ;;  %v2337_v60 = vpop.f32.mrb[7].mxu0  ;;  %v2775_v58 = vld [vmem:[%s3565_s8 + $0x90] sm:$0xff]  }
 0x3af   :  { %v2777_v60 = vld [vmem:[%s3565_s8 + $0xa0] sm:$0xff]  }
 0x3b0   :  { %v803_v61 = vadd.f32 %v802_v59, %v795_v48  ;;  %v804_v0 = vadd.f32 %v802_v59, %v796_v50  ;;  %v805_v1 = vadd.f32 %v802_v59, %v797_v56  ;;  %v806_v3 = vadd.f32 %v802_v59, %v798_v57  ;;  %v2768_v50 = vld [vmem:[%s3565_s8 + $0x18] sm:$0xff]   ;;  %v2773_v56 = vld [vmem:[%s3565_s8 + $0x80] sm:$0xff]   ;;  %v2774_v57 = vld [vmem:[%s3565_s8 + $0x88] sm:$0xff]  }
 0x3b1   :  { %v2776_v59 = vld [vmem:[%s3565_s8 + $0x98] sm:$0xff]  }
 0x3b2   :  { %v809_v6 = vmax.f32 %v805_v1, 0.0  ;;  %v810_v8 = vmax.f32 %v806_v3, 0.0  ;;  %v807_v9 = vmax.f32 %v803_v61, 0.0  ;;  %v808_v10 = vmax.f32 %v804_v0, 0.0  ;;  %v2778_v61 = vld [vmem:[%s3565_s8 + $0xa8] sm:$0xff]   ;;  %v2779_v0 = vld [vmem:[%s3565_s8 + $0xb0] sm:$0xff]  }
 0x3b3   :  { %v2780_v1 = vld [vmem:[%s3565_s8 + $0xb8] sm:$0xff]  }
 0x3b4   :  { %v815_v11 = vrot.slane %v809_v6, 7  ;;  %v830_v30 = vrot.slane %v810_v8, 1  ;;  %v811_v12 = vpack.c.bf16 %v808_v10, %v807_v9  ;;  %v812_v32 = vpack.c.bf16 %v810_v8, %v809_v6 }
 0x3b5   :  { %v813_v31 = vrot.slane %v807_v9, 7  ;;  %v814_v13 = vrot.slane %v808_v10, 7  ;;  %v816_v15 = vrot.slane %v810_v8, 7  ;;  %v827_v17 = vrot.slane %v807_v9, 1 }
 0x3b6   :  { %2354 = vmatprep.mubr.bf16.mxu0 %v811_v12  ;;  %v828_v19 = vrot.slane %v808_v10, 1  ;;  %v829_v20 = vrot.slane %v809_v6, 1 }
 0x3b7   :  { %2355 = vmatmul.mubr.bf16.vlgmr.msra.gmra.mrb[8].mxu0 %v812_v32  ;;  %v819_v22 = vsel %vm137_vm1, %v813_v31, %v814_v13  ;;  %v820_v23 = vsel %vm137_vm1, %v816_v15, %v813_v31  ;;  %v817_v25 = vsel %vm137_vm1, %v815_v11, %v816_v15  ;;  %v818_v26 = vsel %vm137_vm1, %v814_v13, %v815_v11 }
 0x3b8   :  { %2359 = vmatpush3.bf16.msra.mxu0 %v2765_v41  ;;  %v821_v33 = vmul.f32 %v820_v23, %v3162_v53  ;;  %v822_v34 = vmul.f32 %v819_v22, %v3166_v55  ;;  %v823_v35 = vmul.f32 %v818_v26, %v3160_v52  ;;  %v824_v36 = vmul.f32 %v817_v25, %v3164_v54 }
 0x3b9   :  { %2360 = vmatprep.subr.bf16.mxu0 %v2766_v29  ;;  %v832_v39 = vsel %vm172_vm2, %v828_v19, %v829_v20  ;;  %v833_v40 = vsel %vm172_vm2, %v827_v17, %v828_v19  ;;  %v831_v53 = vsel %vm172_vm2, %v829_v20, %v830_v30  ;;  %v834_v55 = vsel %vm172_vm2, %v830_v30, %v827_v17 }
 0x3ba   :  { %v825_v52 = vpack.c.bf16 %v822_v34, %v821_v33  ;;  %v826_v41 = vpack.c.bf16 %v824_v36, %v823_v35  ;;  %v835_v54 = vmul.f32 %v833_v40, %v3174_v63  ;;  %v836_v43 = vmul.f32 %v832_v39, %v3172_v62  ;;  %v2769_v63 = vld [vmem:[%s3565_s8 + $0x20] sm:$0xff]   ;;  %v2770_v62 = vld [vmem:[%s3565_s8 + $0x28] sm:$0xff]  }
 0x3bb   :  { %v837_v46 = vmul.f32 %v831_v53, %v3182_v5  ;;  %v838_v47 = vmul.f32 %v834_v55, %v3180_v4  ;;  %v2771_v4 = vld [vmem:[%s3565_s8 + $0x30] sm:$0xff]   ;;  %v2772_v5 = vld [vmem:[%s3565_s8 + $0x38] sm:$0xff]  }
 0x3bc   :  { %2361 = vmatpush3.bf16.msra.mxu0 %v2766_v29  ;;  %2374 = vmatprep.mubr.bf16.mxu0 %v825_v52  ;;  %v839_v48 = vpack.c.bf16 %v836_v43, %v835_v54 }
 0x3bd   :  { %2362 = vmatprep.subr.bf16.mxu0 %v2767_v38  ;;  %v840_v7 = vpack.c.bf16 %v838_v47, %v837_v46 }
 0x3c0   :  { %2363 = vmatpush3.bf16.msra.mxu0 %v2767_v38 }
 0x3c1   :  { %2364 = vmatprep.subr.bf16.mxu0 %v2768_v50 }
 0x3c4   :  { %2365 = vmatpush3.bf16.msra.mxu0 %v2768_v50 }
 0x3c5   :  { %2366 = vmatprep.subr.bf16.mxu0 %v2769_v63 }
 0x3c8   :  { %2367 = vmatpush3.bf16.msra.mxu0 %v2769_v63  ;;  %v2781_v63 = vld [vmem:[#allocation8] sm:$0xff]  }
 0x3c9   :  { %2368 = vmatprep.subr.bf16.mxu0 %v2770_v62 }
 0x3cc   :  { %2369 = vmatpush3.bf16.msra.mxu0 %v2770_v62  ;;  %v1356_v62 = vld [vmem:[%s3567_s10] sm:$0x1] }
 0x3cd   :  { %2370 = vmatprep.subr.bf16.mxu0 %v2771_v4 }
 0x3d0   :  { %2371 = vmatpush3.bf16.msra.mxu0 %v2771_v4 }
 0x3d1   :  { %2372 = vmatprep.subr.bf16.mxu0 %v2772_v5 }
 0x3d4   :  { %2373 = vmatpush3.bf16.msra.mxu0 %v2772_v5 }
 0x3d5   :  { %2378 = vmatprep.subr.bf16.mxu0 %v2773_v56 }
 0x3d7   :  { %2375 = vmatmul.mubr.bf16.vlgmr.msra.gmra.mrb[8].mxu0 %v826_v41 }
 0x3d8   :  { %2379 = vmatpush3.bf16.msra.mxu0 %v2773_v56  ;;  %2394 = vmatprep.mubr.bf16.mxu0 %v839_v48  ;;  %v1352_v48 = vld [vmem:[%s3566_s9] sm:$0x1]  ;;  %v2782_v56 = vld [vmem:[#allocation8 + $0x8] sm:$0xff]  }
 0x3d9   :  { %2380 = vmatprep.subr.bf16.mxu0 %v2774_v57 }
 0x3dc   :  { %2381 = vmatpush3.bf16.msra.mxu0 %v2774_v57  ;;  %v2783_v57 = vld [vmem:[#allocation8 + $0x10] sm:$0xff]  }
 0x3dd   :  { %2382 = vmatprep.subr.bf16.mxu0 %v2775_v58 }
 0x3e0   :  { %2383 = vmatpush3.bf16.msra.mxu0 %v2775_v58  ;;  %v2784_v58 = vld [vmem:[#allocation8 + $0x18] sm:$0xff]  }
 0x3e1   :  { %2384 = vmatprep.subr.bf16.mxu0 %v2776_v59 }
 0x3e4   :  { %2385 = vmatpush3.bf16.msra.mxu0 %v2776_v59 }
 0x3e5   :  { %2386 = vmatprep.subr.bf16.mxu0 %v2777_v60 }
 0x3e8   :  { %2387 = vmatpush3.bf16.msra.mxu0 %v2777_v60 }
 0x3e9   :  { %2388 = vmatprep.subr.bf16.mxu0 %v2778_v61 }
 0x3ec   :  { %2389 = vmatpush3.bf16.msra.mxu0 %v2778_v61 }
 0x3ed   :  { %2390 = vmatprep.subr.bf16.mxu0 %v2779_v0 }
 0x3f0   :  { %2391 = vmatpush3.bf16.msra.mxu0 %v2779_v0 }
 0x3f1   :  { %2392 = vmatprep.subr.bf16.mxu0 %v2780_v1 }
 0x3f4   :  { %2393 = vmatpush3.bf16.msra.mxu0 %v2780_v1 }
 0x3f5   :  { %2690 = vmatprep.subr.bf16.mxu0 %v2916_v44 }
 0x3f7   :  { %2395 = vmatmul.mubr.bf16.vlgmr.msra.gmra.mrb[8].mxu0 %v840_v7 }
 0x3f8   :  { %2692 = vmatpush3.bf16.msra.mxu0 %v3139_v45  ;;  %2557 = vmatprep.mubr.msk.f32.mxu0 %vm2917_vm3, %v2918_v27 }
 0x3f9   :  { %2693 = vmatprep.subr.bf16.mxu0 %v2916_v44 }
 0x3fc   :  { %2695 = vmatpush3.bf16.msra.mxu0 %v3151_v49 }
 0x3fd   :  { %2696 = vmatprep.subr.bf16.mxu0 %v2916_v44 }
 0x400   :  { %2698 = vmatpush3.bf16.msra.mxu0 %v3155_v51 }
 0x401   :  { %2699 = vmatprep.subr.bf16.mxu0 %v2916_v44 }
 0x404   :  { %2701 = vmatpush3.bf16.msra.mxu0 %v3194_v14 }
 0x405   :  { %2702 = vmatprep.subr.bf16.mxu0 %v2916_v44 }
 0x408   :  { %2704 = vmatpush3.bf16.msra.mxu0 %v3204_v18 }
 0x409   :  { %2705 = vmatprep.subr.bf16.mxu0 %v2916_v44 }
 0x40c   :  { %2707 = vmatpush3.bf16.msra.mxu0 %v3214_v21 }
 0x40d   :  { %2708 = vmatprep.subr.bf16.mxu0 %v2916_v44 }
 0x410   :  { %2710 = vmatpush3.bf16.msra.mxu0 %v3224_v24 }
 0x411   :  { %2711 = vmatprep.subr.bf16.mxu0 %v2916_v44 }
 0x414   :  { %2713 = vmatpush3.bf16.msra.mxu0 %v3236_v28 }
 0x415   :  { %2565 = vmatprep.subr.mxu0 %v2918_v27 }
 0x4ca   :  { %v3435_v3 = vpop.f32.mrb[8].mxu0 }
 0x4cb   :  { %v3437_v6 = vpop.f32.mrb[9].mxu0  ;;  %v1197_v12 = vmul.f32 %v3435_v3, %v3435_v3 }
 0x4cc   :  { %v3439_v8 = vpop.f32.mrb[10].mxu0  ;;  %v1195_v10 = vmul.f32 %v3437_v6, %v3437_v6 }
 0x4cd   :  { %v3441_v9 = vpop.f32.mrb[11].mxu0  ;;  %v1198_v31 = vmul.f32 %v3439_v8, %v3439_v8 }
 0x4ce   :  { %v1186_v11 = vadd.f32 %v3441_v9, %v3437_v6  ;;  %v1196_v30 = vmul.f32 %v3441_v9, %v3441_v9 }
 0x4d0   :  { %v1187_v32 = vadd.f32 %v3435_v3, %v1186_v11  ;;  %v1199_v29 = vadd.f32 %v1196_v30, %v1195_v10 }
 0x4d2   :  { %v1188_v13 = vadd.f32 %v3439_v8, %v1187_v32  ;;  %v1200_v15 = vadd.f32 %v1199_v29, %v1197_v12 }
 0x4d4   :  { %v1189_v17 = vrot.slane %v1188_v13, 4  ;;  %v1201_v19 = vadd.f32 %v1200_v15, %v1198_v31 }
 0x4d6   :  { %v1190_v20 = vadd.f32 %v1189_v17, %v1188_v13  ;;  %v1202_v33 = vrot.slane %v1201_v19, 4 }
 0x4d8   :  { %v1191_v22 = vrot.slane %v1190_v20, 2  ;;  %v1203_v34 = vadd.f32 %v1202_v33, %v1201_v19 }
 0x4da   :  { %v1192_v23 = vadd.f32 %v1191_v22, %v1190_v20  ;;  %v1204_v35 = vrot.slane %v1203_v34, 2 }
 0x4dc   :  { %v1193_v25 = vrot.slane %v1192_v23, 1  ;;  %v1205_v36 = vadd.f32 %v1204_v35, %v1203_v34 }
 0x4de   :  { %v1194_v26 = vadd.f32 %v1193_v25, %v1192_v23  ;;  %v1206_v38 = vrot.slane %v1205_v36, 1 }
 0x4e0   :  { %2431 = vmatmul.mubr.f32.vlgmr.msra.gmra.mrb[4].mxu1 %v1194_v26  ;;  %v1207_v39 = vadd.f32 %v1206_v38, %v1205_v36 }
 0x4e1   :  { %2644 = vmatpush3.bf16.msra.mxu1 %v3139_v45  ;;  %2465 = vmatprep.mubr.msk.f32.mxu1 %vm2917_vm3, %v2918_v27 }
 0x4e2   :  { %2645 = vmatprep.subr.bf16.mxu1 %v2916_v44 }
 0x4e5   :  { %2647 = vmatpush3.bf16.msra.mxu1 %v3151_v49 }
 0x4e6   :  { %2648 = vmatprep.subr.bf16.mxu1 %v2916_v44 }
 0x4e9   :  { %2650 = vmatpush3.bf16.msra.mxu1 %v3155_v51 }
 0x4ea   :  { %2651 = vmatprep.subr.bf16.mxu1 %v2916_v44 }
 0x4ed   :  { %2653 = vmatpush3.bf16.msra.mxu1 %v3194_v14 }
 0x4ee   :  { %2654 = vmatprep.subr.bf16.mxu1 %v2916_v44 }
 0x4f1   :  { %2656 = vmatpush3.bf16.msra.mxu1 %v3204_v18 }
 0x4f2   :  { %2657 = vmatprep.subr.bf16.mxu1 %v2916_v44 }
 0x4f5   :  { %2659 = vmatpush3.bf16.msra.mxu1 %v3214_v21 }
 0x4f6   :  { %2660 = vmatprep.subr.bf16.mxu1 %v2916_v44 }
 0x4f9   :  { %2662 = vmatpush3.bf16.msra.mxu1 %v3224_v24 }
 0x4fa   :  { %2663 = vmatprep.subr.bf16.mxu1 %v2916_v44 }
 0x4fd   :  { %2665 = vmatpush3.bf16.msra.mxu1 %v3236_v28 }
 0x4fe   :  { %2468 = vmatprep.subr.mxu1 %v2918_v27 }
 0x500   :  { %2466 = vmatmul.mubr.f32.vlgmr.msra.gmra.mrb[6].mxu1 %v1207_v39 }
 0x501   :  { %2469 = vmatpush3.msra.mxu1 %v3302_v2  ;;  %2470 = vmatprep.mubr.msk.f32.mxu1 %vm2917_vm3, %v2918_v27 }
 0x502   :  { %2473 = vmatprep.subr.mxu1 %v2918_v27 }
 0x5b3   :  { %v1274_v40 = vpop.f32.mrb[4].mxu1 }
 0x5b4   :  { %v2432_v53 = vpop.f32.mrb[5].mxu1  ;;  %v1348_v55 = vmul.f32 0.001953125, %v1274_v40 }
 0x5b6   :  { %v1350_v41 = vmul.f32 %v1348_v55, %v1348_v55 }
 0x5d3   :  { %v1344_v52 = vpop.f32.mrb[6].mxu1 }
 0x5d4   :  { %v1349_v54 = vmul.f32 0.001953125, %v1344_v52  ;;  %v2467_v43 = vpop.f32.mrb[7].mxu1 }
 0x5d6   :  { %v1351_v46 = vsub.f32 %v1349_v54, %v1350_v41 }
 0x5d8   :  { %v1353_v47 = vadd.f32 1e-05, %v1351_v46  ;;  %v1768_v46 = vld [vmem:[%s3569_s12] sm:$0x1]  ;;  %s2919_s12 = smov [#allocation10]  }
 0x5da   :  { %2787 = vrsqrt.f32 %v1353_v47 }
 0x5e4   :  { %v2788_v50 = vpop.eup %2787 }
 0x5e5   :  { %v1355_v7 = vmul.f32 %v2788_v50, %v1352_v48 }
 0x5e7   :  { %2471 = vmatmul.mubr.msk.f32.vlgmr.msra.gmra.mrb[8].mxu1 %vm644_vm4, %v1355_v7  ;;  %v1357_v4 = vmul.f32 %v1355_v7, %v1348_v55 }
 0x5e8   :  { %2474 = vmatpush3.msra.mxu1 %v3302_v2  ;;  %2475 = vmatprep.mubr.msk.f32.mxu1 %vm2917_vm3, %v2918_v27 }
 0x5e9   :  { %2478 = vmatprep.subr.bf16.mxu1 %v2781_v63  ;;  %v1358_v5 = vsub.f32 %v1356_v62, %v1357_v4 }
 0x5eb   :  { %2476 = vmatmul.mubr.msk.f32.vlgmr.msra.gmra.mrb[10].mxu1 %vm644_vm4, %v1358_v5 }
 0x5ec   :  { %2479 = vmatpush3.bf16.msra.mxu1 %v2781_v63  ;;  %2486 = vmatprep.mubr.msk.bf16.mxu1 %vm244_vm0, %v3095_v16 }
 0x5ed   :  { %2480 = vmatprep.subr.bf16.mxu1 %v2782_v56 }
 0x5f0   :  { %2481 = vmatpush3.bf16.msra.mxu1 %v2782_v56 }
 0x5f1   :  { %2482 = vmatprep.subr.bf16.mxu1 %v2783_v57 }
 0x5f4   :  { %2483 = vmatpush3.bf16.msra.mxu1 %v2783_v57 }
 0x5f5   :  { %2484 = vmatprep.subr.bf16.mxu1 %v2784_v58 }
 0x5f8   :  { %2485 = vmatpush3.bf16.msra.mxu1 %v2784_v58 }
 0x5f9   :  { %2666 = vmatprep.subr.bf16.mxu1 %v2916_v44 }
 0x5fb   :  { %2487 = vmatmul.mubr.msk.bf16.vlgmr.msra.gmra.mrb[12].mxu1 %vm244_vm0, %v3125_v37 }
 0x5fc   :  { %2668 = vmatpush3.bf16.msra.mxu1 %v3139_v45  ;;  %2522 = vmatprep.mubr.msk.f32.mxu1 %vm2917_vm3, %v2918_v27 }
 0x5fd   :  { %2669 = vmatprep.subr.bf16.mxu1 %v2916_v44 }
 0x600   :  { %2671 = vmatpush3.bf16.msra.mxu1 %v3151_v49 }
 0x601   :  { %2672 = vmatprep.subr.bf16.mxu1 %v2916_v44 }
 0x604   :  { %2674 = vmatpush3.bf16.msra.mxu1 %v3155_v51 }
 0x605   :  { %2675 = vmatprep.subr.bf16.mxu1 %v2916_v44 }
 0x608   :  { %2677 = vmatpush3.bf16.msra.mxu1 %v3194_v14 }
 0x609   :  { %2678 = vmatprep.subr.bf16.mxu1 %v2916_v44 }
 0x60c   :  { %2680 = vmatpush3.bf16.msra.mxu1 %v3204_v18 }
 0x60d   :  { %2681 = vmatprep.subr.bf16.mxu1 %v2916_v44 }
 0x610   :  { %2683 = vmatpush3.bf16.msra.mxu1 %v3214_v21 }
 0x611   :  { %2684 = vmatprep.subr.bf16.mxu1 %v2916_v44 }
 0x614   :  { %2686 = vmatpush3.bf16.msra.mxu1 %v3224_v24 }
 0x615   :  { %2687 = vmatprep.subr.bf16.mxu1 %v2916_v44 }
 0x618   :  { %2689 = vmatpush3.bf16.msra.mxu1 %v3236_v28 }
 0x619   :  { %2560 = vmatprep.subr.mxu1 %v2918_v27 }
 0x6ba   :  { %v1428_v16 = vpop.f32.mrb[8].mxu1 }
 0x6bb   :  { %v1508_v37 = vrot.slane %v1428_v16, %v3339_v42  ;;  %v2472_v45 = vpop.f32.mrb[9].mxu1 }
 0x6bd   :  { %v1509_v49 = vmul.f32 %v1508_v37, %v3437_v6  ;;  %v1510_v51 = vmul.f32 %v1508_v37, %v3441_v9  ;;  %v1511_v14 = vmul.f32 %v3435_v3, %v1508_v37  ;;  %v1512_v18 = vmul.f32 %v3439_v8, %v1508_v37 }
 0x6be   :  { %v1501_v21 = vpop.f32.mrb[10].mxu1 }
 0x6bf   :  { %v1516_v24 = vrot.slane %v1501_v21, %v3339_v42  ;;  %v2477_v44 = vpop.f32.mrb[11].mxu1 }
 0x6c1   :  { %v3517_v59 = vadd.f32 %v1516_v24, %v1509_v49  ;;  %v3519_v28 = vadd.f32 %v1516_v24, %v1510_v51  ;;  %v3521_v60 = vadd.f32 %v1516_v24, %v1511_v14  ;;  %v3523_v61 = vadd.f32 %v1516_v24, %v1512_v18 }
 0x6ce   :  { %v2488_v0 = vpop.f32.mrb[12].mxu1 }
 0x6cf   :  { %v1587_v1 = vpop.f32.mrb[13].mxu1  ;;  %v1613_v8 = vmul.f32 %v2488_v0, %v2488_v0 }
 0x6d0   :  { %v2489_v6 = vpop.f32.mrb[14].mxu1  ;;  %v1611_v10 = vmul.f32 %v1587_v1, %v1587_v1 }
 0x6d1   :  { %v1590_v9 = vpop.f32.mrb[15].mxu1  ;;  %v1614_v32 = vmul.f32 %v2489_v6, %v2489_v6 }
 0x6d2   :  { %v1602_v3 = vadd.f32 %v1590_v9, %v1587_v1  ;;  %v1612_v11 = vmul.f32 %v1590_v9, %v1590_v9 }
 0x6d4   :  { %v1603_v30 = vadd.f32 %v2488_v0, %v1602_v3  ;;  %v1615_v12 = vadd.f32 %v1612_v11, %v1611_v10 }
 0x6d6   :  { %v1604_v29 = vadd.f32 %v2489_v6, %v1603_v30  ;;  %v1616_v31 = vadd.f32 %v1615_v12, %v1613_v8 }
 0x6d8   :  { %v1605_v13 = vrot.slane %v1604_v29, 4  ;;  %v1617_v15 = vadd.f32 %v1616_v31, %v1614_v32 }
 0x6da   :  { %v1606_v17 = vadd.f32 %v1605_v13, %v1604_v29  ;;  %v1618_v19 = vrot.slane %v1617_v15, 4 }
 0x6dc   :  { %v1607_v20 = vrot.slane %v1606_v17, 2  ;;  %v1619_v22 = vadd.f32 %v1618_v19, %v1617_v15 }
 0x6de   :  { %v1608_v23 = vadd.f32 %v1607_v20, %v1606_v17  ;;  %v1620_v25 = vrot.slane %v1619_v22, 2 }
 0x6e0   :  { %v1609_v26 = vrot.slane %v1608_v23, 1  ;;  %v1621_v33 = vadd.f32 %v1620_v25, %v1619_v22 }
 0x6e2   :  { %v1610_v34 = vadd.f32 %v1609_v26, %v1608_v23  ;;  %v1622_v35 = vrot.slane %v1621_v33, 1 }
 0x6e4   :  { %2523 = vmatmul.mubr.f32.vlgmr.msra.gmra.mrb[16].mxu1 %v1610_v34  ;;  %v1623_v36 = vadd.f32 %v1622_v35, %v1621_v33 }
 0x6e5   :  { %2561 = vmatpush3.msra.mxu1 %v3302_v2  ;;  %2562 = vmatprep.mubr.msk.f32.mxu1 %vm2917_vm3, %v2918_v27 }
 0x6e6   :  { %2558 = vmatmul.mubr.f32.vlgmr.msra.gmra.mrb[12].mxu0 %v1623_v36 }
 0x6e7   :  { %2566 = vmatpush3.msra.mxu0 %v3302_v2  ;;  %2567 = vmatprep.mubr.msk.f32.mxu0 %vm2917_vm3, %v2918_v27  ;;  %v1772_v27 = vld [vmem:[%s3570_s13] sm:$0x1]  ;;  %s1954_s13 = sshll.u32 %s2919_s12, 4  ;;  %s1955_s13 = int_to_ptr.vmem [resolvable:$true] %s1954_s13 }
 0x6e8   :  { %s2879_s28 = scalar_lea.vmem %s1955_s13, 512  ;;  %p2884_p5 = scmp.lt.s32.totalorder %s1955_s13, %s1955_s13 }
 0x6e9   :  { %p2880_p4 = scmp.ne.s32.totalorder %s1955_s13, %s2879_s28  ;;  %p2885_p6 = scmp.lt.s32.totalorder %s2879_s28, %s2879_s28 }
 0x6eb   :  { %p2886_p7 = por %p2885_p6, %p2884_p5 }
 0x6ed   :  { %p2887_p8 = pnand %p2886_p7, %p2880_p4 }
 0x7b7   :  { %v1690_v38 = vpop.f32.mrb[16].mxu1 }
 0x7b8   :  { %v1764_v39 = vmul.f32 0.001953125, %v1690_v38  ;;  %v2524_v40 = vpop.f32.mrb[17].mxu1 }
 0x7b9   :  { %v1760_v53 = vpop.f32.mrb[12].mxu0 }
 0x7ba   :  { %v1766_v55 = vmul.f32 %v1764_v39, %v1764_v39  ;;  %v1765_v52 = vmul.f32 0.001953125, %v1760_v53  ;;  %v2559_v41 = vpop.f32.mrb[13].mxu0 }
 0x7bc   :  { %v1767_v54 = vsub.f32 %v1765_v52, %v1766_v55 }
 0x7be   :  { %v1769_v43 = vadd.f32 1e-05, %v1767_v54 }
 0x7c0   :  { %2789 = vrsqrt.f32 %v1769_v43 }
 0x7ca   :  { %v2790_v47 = vpop.eup %2789 }
 0x7cb   :  { %v1771_v48 = vmul.f32 %v2790_v47, %v1768_v46 }
 0x7cd   :  { %2563 = vmatmul.mubr.msk.f32.vlgmr.msra.gmra.mrb[18].mxu1 %vm644_vm4, %v1771_v48  ;;  %v1773_v2 = vmul.f32 %v1771_v48, %v1764_v39 }
 0x7cf   :  { %v1774_v50 = vsub.f32 %v1772_v27, %v1773_v2 }
 0x7d1   :  { %2568 = vmatmul.mubr.msk.f32.vlgmr.msra.gmra.mrb[14].mxu0 %vm644_vm4, %v1774_v50 }
 0x8a0   :  { %v1844_v7 = vpop.f32.mrb[18].mxu1 }
 0x8a1   :  { %v1924_v63 = vrot.slane %v1844_v7, %v3339_v42  ;;  %v2564_v62 = vpop.f32.mrb[19].mxu1 }
 0x8a3   :  { %v1925_v4 = vmul.f32 %v1924_v63, %v1587_v1  ;;  %v1926_v5 = vmul.f32 %v1924_v63, %v1590_v9  ;;  %v1927_v56 = vmul.f32 %v2488_v0, %v1924_v63  ;;  %v1928_v57 = vmul.f32 %v2489_v6, %v1924_v63 }
 0x8a4   :  { %v1917_v58 = vpop.f32.mrb[14].mxu0 }
 0x8a5   :  { %v1932_v16 = vrot.slane %v1917_v58, %v3339_v42  ;;  %v2569_v37 = vpop.f32.mrb[15].mxu0 }
 0x8a7   :  { %v1933_v45 = vadd.f32 %v1932_v16, %v1925_v4  ;;  %v1934_v49 = vadd.f32 %v1932_v16, %v1926_v5  ;;  %v1935_v51 = vadd.f32 %v1932_v16, %v1927_v56  ;;  %v1936_v14 = vadd.f32 %v1932_v16, %v1928_v57 }
 0x8a9   :  { %v1937_v18 = vadd.f32 %v1933_v45, %v3517_v59  ;;  %v1938_v21 = vadd.f32 %v1934_v49, %v3519_v28  ;;  %v1939_v24 = vadd.f32 %v1935_v51, %v3521_v60  ;;  %v1940_v44 = vadd.f32 %v1936_v14, %v3523_v61 }
 0x8ab   :  { %v1941_v0 = vmax.f32 %v1937_v18, 0.0  ;;  %v1942_v1 = vmax.f32 %v1938_v21, 0.0  ;;  %v1943_v6 = vmax.f32 %v1939_v24, 0.0  ;;  %v1944_v9 = vmax.f32 %v1940_v44, 0.0 }
 0x8ad   :  { %1945 = vst [vmem:[#allocation10] sm:$0xff] %v1941_v0  ;;  %1946 = vst [vmem:[#allocation10 + $0x8] sm:$0xff] %v1942_v1 }
 0x8ae   :  { %1947 = vst [vmem:[#allocation10 + $0x10] sm:$0xff] %v1943_v6  ;;  %1948 = vst [vmem:[#allocation10 + $0x18] sm:$0xff] %v1944_v9 }
 0x8af   :  { %2890 = shalt.err (!%p2887_p8)
}
 0x8b0   :  { %s2891_s15 = scalar_lea.hbm %s3571_s14, 512 }
 0x8b1   :  { %p2892_p9 = scmp.ne.s32.totalorder %s3571_s14, %s2891_s15  ;;  %p2895_p10 = scmp.lt.u32.totalorder %s2891_s15, %s3571_s14 }
 0x8b3   :  { %p2897_p11 = pnand %p2895_p10, %p2892_p9 }
 0x8b5   :  { %2900 = shalt.err (!%p2897_p11)
}
 0x8b6   :  { %s2920_s19 = smov 128   ;;  %s2921_s20 = smov 8  }
 0x8b7   :  { %1960 = dma.vmem_to_hbm [thread:$0]  %s1955_s13, 512, %s3571_s14, [#allocation4], %s2920_s19, %s2920_s19, %s2921_s20  }
 0x8b8   :  { %2907 = dma.done.wait [#allocation4], 512  }
 0x8b9   :  { %2908 = vsyncadd [#allocation4], 4294966784 }
 0x8ba   :  { %1964 = vsyncpa [#allocation3], 1 }
 0x8bb   :  { %1965 = vsyncpa [#allocation6], 1 }
 0x8bc   :  { %1966 = vsyncpa [#allocation9], 1 }
 0x8bd   :  { %1967 = vsyncpa [#allocation4], 1 }

</bundles_post_ra>
